<compile_context>
chip_gen: v5e
topology: v5e:2x2
jax: 0.10.0
libtpu: 0.0.40
codegen_flags: <defaults>
</compile_context>

<pallas_src>
import functools

import jax
import jax.numpy as jnp
from jax.experimental import pallas as pl
from jax.experimental.pallas import tpu as pltpu

IN_CH = 300
OUT_CH = 64
KSIZE = 2
SEQ_LEN = 20
CONV_OUT_LEN = SEQ_LEN - KSIZE + 1   # 19
FLAT = OUT_CH * CONV_OUT_LEN         # 1216
H1 = 256
H2 = 128
NUM_CLASSES = 7
C_PAD = 128                          # class dim padded to a full lane tile


def _round_up(n, m):
    return ((n + m - 1) // m) * m


# ------------------------------ fused kernel ------------------------------- #

def _convnet_kernel(x_ref, wc_ref, bc_ref, w1_ref, b1_ref, w2_ref, b2_ref,
                    w3_ref, b3_ref, o_ref):
    # x_ref : (20*TB, 300) bf16  -- rows ordered t-major, batch-minor; channels on lanes
    # wc_ref: (300, 128)   bf16  -- [tap0 | tap1] conv weights
    # bc_ref: (1, 64)      f32
    # w1_ref: (19, 64, 256) bf16 -- w1 permuted so the channel-major flatten is folded in
    # b1_ref: (1, 256)     f32
    # w2_ref: (256, 128)   bf16
    # b2_ref: (1, 128)     f32
    # w3_ref: (128, 128)   bf16  -- classes zero-padded to 128 lanes
    # b3_ref: (1, 128)     f32   -- padded classes biased to -1e9
    # o_ref : (TB, 128)    f32
    tb = o_ref.shape[0]

    # Conv1d(k=2) as one MXU matmul: M = 20*TB, K = 300, N = 128 (both taps).
    g = jnp.dot(x_ref[...], wc_ref[...], preferred_element_type=jnp.float32)
    # Row r = t*TB + b.  conv[b, o, t] = g[t*TB+b, o] + g[(t+1)*TB+b, 64+o].
    y = g[:CONV_OUT_LEN * tb, :OUT_CH] + g[tb:, OUT_CH:] + bc_ref[...]
    y = jnp.maximum(y, 0.0)                                   # (19*TB, 64) f32

    # FC1 with the PyTorch reshape(-1, 64*19) folded into w1p:
    #   z1[b, :] = b1 + sum_t y[t*TB + b, :] @ w1p[t]
    acc = jnp.dot(y[0:tb].astype(jnp.bfloat16), w1_ref[0],
                  preferred_element_type=jnp.float32)
    for t in range(1, CONV_OUT_LEN):
        acc = acc + jnp.dot(y[t * tb:(t + 1) * tb].astype(jnp.bfloat16),
                            w1_ref[t], preferred_element_type=jnp.float32)
    a1 = jnp.maximum(acc + b1_ref[...], 0.0).astype(jnp.bfloat16)

    # FC2 + ReLU
    a2 = jnp.maximum(
        jnp.dot(a1, w2_ref[...], preferred_element_type=jnp.float32)
        + b2_ref[...], 0.0).astype(jnp.bfloat16)

    # FC3 (classes padded to 128) + numerically-stable softmax.
    z = (jnp.dot(a2, w3_ref[...], preferred_element_type=jnp.float32)
         + b3_ref[...])
    z = z - jnp.max(z, axis=-1, keepdims=True)
    e = jnp.exp(z)
    o_ref[...] = e * pl.reciprocal(jnp.sum(e, axis=-1, keepdims=True),
                                   approx=True)


# --------------------------- one-time weight prep -------------------------- #

def prepare_params(params):
    """Transpose / permute / pad / cast the PyTorch-layout params once."""
    wc = params["wc"].astype(jnp.float32)      # (64, 300, 2)
    w1 = params["w1"].astype(jnp.float32)      # (256, 1216)
    w2 = params["w2"].astype(jnp.float32)      # (128, 256)
    w3 = params["w3"].astype(jnp.float32)      # (C, 128)
    c = w3.shape[0]
    assert c <= C_PAD

    # (300, 128): columns 0..63 = tap0 weights, 64..127 = tap1 weights.
    wcboth = jnp.concatenate([wc[:, :, 0].T, wc[:, :, 1].T], axis=1)
    # w1p[t, o, j] = w1[j, o*19 + t]  (folds the channel-major flatten).
    w1p = jnp.transpose(w1.reshape(H1, OUT_CH, CONV_OUT_LEN), (2, 1, 0))
    # Pad classes to 128 lanes; padded logits get -1e9 so softmax gives them 0.
    w3p = jnp.zeros((H2, C_PAD), jnp.float32).at[:, :c].set(w3.T)
    b3p = jnp.full((1, C_PAD), -1e9, jnp.float32).at[0, :c].set(
        params["b3"].astype(jnp.float32))

    return {
        "wcboth": wcboth.astype(jnp.bfloat16),
        "bc": params["bc"].astype(jnp.float32).reshape(1, OUT_CH),
        "w1p": w1p.astype(jnp.bfloat16),
        "b1": params["b1"].astype(jnp.float32).reshape(1, H1),
        "w2t": w2.T.astype(jnp.bfloat16),
        "b2": params["b2"].astype(jnp.float32).reshape(1, H2),
        "w3p": w3p.astype(jnp.bfloat16),
        "b3p": b3p,
    }


# --------------------------------- wrapper --------------------------------- #

@functools.partial(jax.jit, static_argnames=("num_classes",))
def conv_network_forward(x, prepped, num_classes):
    x = x.astype(jnp.float32)                        # matches PyTorch x.float()
    B = x.shape[0]
    TB = min(128, _round_up(B, 16))                  # batch tile per grid step
    Bp = _round_up(B, TB)
    ntiles = Bp // TB

    # Layout glue (cheap XLA copies): bf16, batch-padded, rows ordered
    # (batch_tile, t, b_within_tile) with the 300 channels on lanes.
    xb = jnp.pad(x.astype(jnp.bfloat16), ((0, Bp - B), (0, 0), (0, 0)))
    x2d = (xb.transpose(2, 0, 1)                     # (20, Bp, 300)
           .reshape(SEQ_LEN, ntiles, TB, IN_CH)
           .transpose(1, 0, 2, 3)
           .reshape(ntiles * SEQ_LEN * TB, IN_CH))   # (ntiles*20*TB, 300)

    out = pl.pallas_call(
        _convnet_kernel,
        out_shape=jax.ShapeDtypeStruct((Bp, C_PAD), jnp.float32),
        grid=(ntiles,),
        in_specs=[
            pl.BlockSpec((SEQ_LEN * TB, IN_CH), lambda i: (i, 0)),
            pl.BlockSpec((IN_CH, 2 * OUT_CH), lambda i: (0, 0)),
            pl.BlockSpec((1, OUT_CH), lambda i: (0, 0)),
            pl.BlockSpec((CONV_OUT_LEN, OUT_CH, H1), lambda i: (0, 0, 0)),
            pl.BlockSpec((1, H1), lambda i: (0, 0)),
            pl.BlockSpec((H1, H2), lambda i: (0, 0)),
            pl.BlockSpec((1, H2), lambda i: (0, 0)),
            pl.BlockSpec((H2, C_PAD), lambda i: (0, 0)),
            pl.BlockSpec((1, C_PAD), lambda i: (0, 0)),
        ],
        out_specs=pl.BlockSpec((TB, C_PAD), lambda i: (i, 0)),
        compiler_params=pltpu.CompilerParams(
            dimension_semantics=("parallel",)),
    )(x2d, prepped["wcboth"], prepped["bc"], prepped["w1p"], prepped["b1"],
      prepped["w2t"], prepped["b2"], prepped["w3p"], prepped["b3p"])

    return out[:B, :num_classes]


# --------------------------- pure-JAX reference ----------------------------- #

def reference_forward(x, params):
    x = x.astype(jnp.float32)
    y = jax.lax.conv_general_dilated(
        x, params["wc"], window_strides=(1,), padding="VALID",
        dimension_numbers=("NCH", "OIH", "NCH"))
    y = jnp.maximum(y + params["bc"][None, :, None], 0.0)
    h = y.reshape(x.shape[0], -1)
    a1 = jnp.maximum(h @ params["w1"].T + params["b1"], 0.0)
    a2 = jnp.maximum(a1 @ params["w2"].T + params["b2"], 0.0)
    z = a2 @ params["w3"].T + params["b3"]
    return jax.nn.softmax(z, axis=1)


# ---------------------------------- main ------------------------------------ #

def init_params(key, num_classes):
    ks = jax.random.split(key, 8)
    s = 0.05
    return {
        "wc": s * jax.random.normal(ks[0], (OUT_CH, IN_CH, KSIZE), jnp.float32),
        "bc": s * jax.random.normal(ks[1], (OUT_CH,), jnp.float32),
        "w1": s * jax.random.normal(ks[2], (H1, FLAT), jnp.float32),
        "b1": s * jax.random.normal(ks[3], (H1,), jnp.float32),
        "w2": s * jax.random.normal(ks[4], (H2, H1), jnp.float32),
        "b2": s * jax.random.normal(ks[5], (H2,), jnp.float32),
        "w3": s * jax.random.normal(ks[6], (num_classes, H2), jnp.float32),
        "b3": s * jax.random.normal(ks[7], (num_classes,), jnp.float32),
    }


if __name__ == "__main__":
    key = jax.random.PRNGKey(0)
    k_x, k_p = jax.random.split(key)

    batch = 2
    x = jax.random.normal(k_x, (batch, IN_CH, SEQ_LEN), jnp.float32)
    params = init_params(k_p, NUM_CLASSES)
    prepped = prepare_params(params)          # one-time weight prep (hoisted)

    out = conv_network_forward(x, prepped, NUM_CLASSES)
    out = jax.block_until_ready(out)

    ref = reference_forward(x, params)
    assert out.shape == (batch, NUM_CLASSES)
    assert jnp.allclose(jnp.sum(out, axis=1), 1.0, atol=5e-3)
    assert jnp.allclose(out, ref, atol=1e-2, rtol=1e-2)

    print("KERNEL_OK")
</pallas_src>

<mosaic_0001>
module attributes {stable_mosaic.version = 11 : i64} {
  func.func @_convnet_kernel(%arg0: i32, %arg1: memref<320x300xbf16, #tpu.memory_space<vmem>>, %arg2: memref<300x128xbf16, #tpu.memory_space<vmem>>, %arg3: memref<1x64xf32, #tpu.memory_space<vmem>>, %arg4: memref<19x64x256xbf16, #tpu.memory_space<vmem>>, %arg5: memref<1x256xf32, #tpu.memory_space<vmem>>, %arg6: memref<256x128xbf16, #tpu.memory_space<vmem>>, %arg7: memref<1x128xf32, #tpu.memory_space<vmem>>, %arg8: memref<128x128xbf16, #tpu.memory_space<vmem>>, %arg9: memref<1x128xf32, #tpu.memory_space<vmem>>, %arg10: memref<16x128xf32, #tpu.memory_space<vmem>>) attributes {dimension_semantics = [#tpu.dimension_semantics<parallel>], iteration_bounds = array<i64: 1>, scalar_prefetch = 0 : i64, scratch_operands = 0 : i64, tpu.core_type = #tpu.core_type<tc>, window_params = [{transform_indices = @transform_0, window_bounds = array<i64: 320, 300>}, {pipeline_mode = #tpu.pipeline_mode<synchronous>, transform_indices = @transform_1, window_bounds = array<i64: 300, 128>}, {pipeline_mode = #tpu.pipeline_mode<synchronous>, transform_indices = @transform_2, window_bounds = array<i64: 1, 64>}, {pipeline_mode = #tpu.pipeline_mode<synchronous>, transform_indices = @transform_3, window_bounds = array<i64: 19, 64, 256>}, {pipeline_mode = #tpu.pipeline_mode<synchronous>, transform_indices = @transform_4, window_bounds = array<i64: 1, 256>}, {pipeline_mode = #tpu.pipeline_mode<synchronous>, transform_indices = @transform_5, window_bounds = array<i64: 256, 128>}, {pipeline_mode = #tpu.pipeline_mode<synchronous>, transform_indices = @transform_6, window_bounds = array<i64: 1, 128>}, {pipeline_mode = #tpu.pipeline_mode<synchronous>, transform_indices = @transform_7, window_bounds = array<i64: 128, 128>}, {pipeline_mode = #tpu.pipeline_mode<synchronous>, transform_indices = @transform_8, window_bounds = array<i64: 1, 128>}, {transform_indices = @transform_9, window_bounds = array<i64: 16, 128>}]} {
    %c0 = arith.constant 0 : index
    %c0_0 = arith.constant 0 : index
    %0 = vector.load %arg1[%c0, %c0_0] : memref<320x300xbf16, #tpu.memory_space<vmem>>, vector<320x300xbf16>
    %c0_1 = arith.constant 0 : index
    %c0_2 = arith.constant 0 : index
    %1 = vector.load %arg2[%c0_1, %c0_2] : memref<300x128xbf16, #tpu.memory_space<vmem>>, vector<300x128xbf16>
    %cst = arith.constant dense<0.000000e+00> : vector<320x128xf32>
    %2 = tpu.matmul %0, %1, %cst {dimension_numbers = #tpu.dot_dimension_numbers<[1], [0], [0], [1], [0, 0, 1, 1], [], []>} : vector<320x300xbf16>, vector<300x128xbf16>, vector<320x128xf32> -> vector<320x128xf32>
    %3 = vector.extract_strided_slice %2 {offsets = [0, 0], sizes = [304, 64], strides = [1, 1]} : vector<320x128xf32> to vector<304x64xf32>
    %4 = vector.extract_strided_slice %2 {offsets = [16, 64], sizes = [304, 64], strides = [1, 1]} : vector<320x128xf32> to vector<304x64xf32>
    %5 = arith.addf %3, %4 : vector<304x64xf32>
    %c0_3 = arith.constant 0 : index
    %c0_4 = arith.constant 0 : index
    %6 = vector.load %arg3[%c0_3, %c0_4] : memref<1x64xf32, #tpu.memory_space<vmem>>, vector<1x64xf32>
    %7 = vector.broadcast %6 : vector<1x64xf32> to vector<304x64xf32>
    %8 = arith.addf %5, %7 : vector<304x64xf32>
    %cst_5 = arith.constant 0.000000e+00 : f32
    %9 = vector.broadcast %cst_5 : f32 to vector<304x64xf32>
    %10 = arith.maximumf %8, %9 : vector<304x64xf32>
    %11 = vector.extract_strided_slice %10 {offsets = [0, 0], sizes = [16, 64], strides = [1, 1]} : vector<304x64xf32> to vector<16x64xf32>
    %12 = arith.truncf %11 : vector<16x64xf32> to vector<16x64xbf16>
    %c0_6 = arith.constant 0 : index
    %c0_7 = arith.constant 0 : index
    %c0_8 = arith.constant 0 : index
    %13 = vector.load %arg4[%c0_6, %c0_7, %c0_8] : memref<19x64x256xbf16, #tpu.memory_space<vmem>>, vector<1x64x256xbf16>
    %14 = vector.shape_cast %13 : vector<1x64x256xbf16> to vector<64x256xbf16>
    %cst_9 = arith.constant dense<0.000000e+00> : vector<16x256xf32>
    %15 = tpu.matmul %12, %14, %cst_9 {dimension_numbers = #tpu.dot_dimension_numbers<[1], [0], [0], [1], [0, 0, 1, 1], [], []>} : vector<16x64xbf16>, vector<64x256xbf16>, vector<16x256xf32> -> vector<16x256xf32>
    %16 = vector.extract_strided_slice %10 {offsets = [16, 0], sizes = [16, 64], strides = [1, 1]} : vector<304x64xf32> to vector<16x64xf32>
    %17 = arith.truncf %16 : vector<16x64xf32> to vector<16x64xbf16>
    %c1 = arith.constant 1 : index
    %c0_10 = arith.constant 0 : index
    %c0_11 = arith.constant 0 : index
    %18 = vector.load %arg4[%c1, %c0_10, %c0_11] : memref<19x64x256xbf16, #tpu.memory_space<vmem>>, vector<1x64x256xbf16>
    %19 = vector.shape_cast %18 : vector<1x64x256xbf16> to vector<64x256xbf16>
    %cst_12 = arith.constant dense<0.000000e+00> : vector<16x256xf32>
    %20 = tpu.matmul %17, %19, %cst_12 {dimension_numbers = #tpu.dot_dimension_numbers<[1], [0], [0], [1], [0, 0, 1, 1], [], []>} : vector<16x64xbf16>, vector<64x256xbf16>, vector<16x256xf32> -> vector<16x256xf32>
    %21 = arith.addf %15, %20 : vector<16x256xf32>
    %22 = vector.extract_strided_slice %10 {offsets = [32, 0], sizes = [16, 64], strides = [1, 1]} : vector<304x64xf32> to vector<16x64xf32>
    %23 = arith.truncf %22 : vector<16x64xf32> to vector<16x64xbf16>
    %c2 = arith.constant 2 : index
    %c0_13 = arith.constant 0 : index
    %c0_14 = arith.constant 0 : index
    %24 = vector.load %arg4[%c2, %c0_13, %c0_14] : memref<19x64x256xbf16, #tpu.memory_space<vmem>>, vector<1x64x256xbf16>
    %25 = vector.shape_cast %24 : vector<1x64x256xbf16> to vector<64x256xbf16>
    %cst_15 = arith.constant dense<0.000000e+00> : vector<16x256xf32>
    %26 = tpu.matmul %23, %25, %cst_15 {dimension_numbers = #tpu.dot_dimension_numbers<[1], [0], [0], [1], [0, 0, 1, 1], [], []>} : vector<16x64xbf16>, vector<64x256xbf16>, vector<16x256xf32> -> vector<16x256xf32>
    %27 = arith.addf %21, %26 : vector<16x256xf32>
    %28 = vector.extract_strided_slice %10 {offsets = [48, 0], sizes = [16, 64], strides = [1, 1]} : vector<304x64xf32> to vector<16x64xf32>
    %29 = arith.truncf %28 : vector<16x64xf32> to vector<16x64xbf16>
    %c3 = arith.constant 3 : index
    %c0_16 = arith.constant 0 : index
    %c0_17 = arith.constant 0 : index
    %30 = vector.load %arg4[%c3, %c0_16, %c0_17] : memref<19x64x256xbf16, #tpu.memory_space<vmem>>, vector<1x64x256xbf16>
    %31 = vector.shape_cast %30 : vector<1x64x256xbf16> to vector<64x256xbf16>
    %cst_18 = arith.constant dense<0.000000e+00> : vector<16x256xf32>
    %32 = tpu.matmul %29, %31, %cst_18 {dimension_numbers = #tpu.dot_dimension_numbers<[1], [0], [0], [1], [0, 0, 1, 1], [], []>} : vector<16x64xbf16>, vector<64x256xbf16>, vector<16x256xf32> -> vector<16x256xf32>
    %33 = arith.addf %27, %32 : vector<16x256xf32>
    %34 = vector.extract_strided_slice %10 {offsets = [64, 0], sizes = [16, 64], strides = [1, 1]} : vector<304x64xf32> to vector<16x64xf32>
    %35 = arith.truncf %34 : vector<16x64xf32> to vector<16x64xbf16>
    %c4 = arith.constant 4 : index
    %c0_19 = arith.constant 0 : index
    %c0_20 = arith.constant 0 : index
    %36 = vector.load %arg4[%c4, %c0_19, %c0_20] : memref<19x64x256xbf16, #tpu.memory_space<vmem>>, vector<1x64x256xbf16>
    %37 = vector.shape_cast %36 : vector<1x64x256xbf16> to vector<64x256xbf16>
    %cst_21 = arith.constant dense<0.000000e+00> : vector<16x256xf32>
    %38 = tpu.matmul %35, %37, %cst_21 {dimension_numbers = #tpu.dot_dimension_numbers<[1], [0], [0], [1], [0, 0, 1, 1], [], []>} : vector<16x64xbf16>, vector<64x256xbf16>, vector<16x256xf32> -> vector<16x256xf32>
    %39 = arith.addf %33, %38 : vector<16x256xf32>
    %40 = vector.extract_strided_slice %10 {offsets = [80, 0], sizes = [16, 64], strides = [1, 1]} : vector<304x64xf32> to vector<16x64xf32>
    %41 = arith.truncf %40 : vector<16x64xf32> to vector<16x64xbf16>
    %c5 = arith.constant 5 : index
    %c0_22 = arith.constant 0 : index
    %c0_23 = arith.constant 0 : index
    %42 = vector.load %arg4[%c5, %c0_22, %c0_23] : memref<19x64x256xbf16, #tpu.memory_space<vmem>>, vector<1x64x256xbf16>
    %43 = vector.shape_cast %42 : vector<1x64x256xbf16> to vector<64x256xbf16>
    %cst_24 = arith.constant dense<0.000000e+00> : vector<16x256xf32>
    %44 = tpu.matmul %41, %43, %cst_24 {dimension_numbers = #tpu.dot_dimension_numbers<[1], [0], [0], [1], [0, 0, 1, 1], [], []>} : vector<16x64xbf16>, vector<64x256xbf16>, vector<16x256xf32> -> vector<16x256xf32>
    %45 = arith.addf %39, %44 : vector<16x256xf32>
    %46 = vector.extract_strided_slice %10 {offsets = [96, 0], sizes = [16, 64], strides = [1, 1]} : vector<304x64xf32> to vector<16x64xf32>
    %47 = arith.truncf %46 : vector<16x64xf32> to vector<16x64xbf16>
    %c6 = arith.constant 6 : index
    %c0_25 = arith.constant 0 : index
    %c0_26 = arith.constant 0 : index
    %48 = vector.load %arg4[%c6, %c0_25, %c0_26] : memref<19x64x256xbf16, #tpu.memory_space<vmem>>, vector<1x64x256xbf16>
    %49 = vector.shape_cast %48 : vector<1x64x256xbf16> to vector<64x256xbf16>
    %cst_27 = arith.constant dense<0.000000e+00> : vector<16x256xf32>
    %50 = tpu.matmul %47, %49, %cst_27 {dimension_numbers = #tpu.dot_dimension_numbers<[1], [0], [0], [1], [0, 0, 1, 1], [], []>} : vector<16x64xbf16>, vector<64x256xbf16>, vector<16x256xf32> -> vector<16x256xf32>
    %51 = arith.addf %45, %50 : vector<16x256xf32>
    %52 = vector.extract_strided_slice %10 {offsets = [112, 0], sizes = [16, 64], strides = [1, 1]} : vector<304x64xf32> to vector<16x64xf32>
    %53 = arith.truncf %52 : vector<16x64xf32> to vector<16x64xbf16>
    %c7 = arith.constant 7 : index
    %c0_28 = arith.constant 0 : index
    %c0_29 = arith.constant 0 : index
    %54 = vector.load %arg4[%c7, %c0_28, %c0_29] : memref<19x64x256xbf16, #tpu.memory_space<vmem>>, vector<1x64x256xbf16>
    %55 = vector.shape_cast %54 : vector<1x64x256xbf16> to vector<64x256xbf16>
    %cst_30 = arith.constant dense<0.000000e+00> : vector<16x256xf32>
    %56 = tpu.matmul %53, %55, %cst_30 {dimension_numbers = #tpu.dot_dimension_numbers<[1], [0], [0], [1], [0, 0, 1, 1], [], []>} : vector<16x64xbf16>, vector<64x256xbf16>, vector<16x256xf32> -> vector<16x256xf32>
    %57 = arith.addf %51, %56 : vector<16x256xf32>
    %58 = vector.extract_strided_slice %10 {offsets = [128, 0], sizes = [16, 64], strides = [1, 1]} : vector<304x64xf32> to vector<16x64xf32>
    %59 = arith.truncf %58 : vector<16x64xf32> to vector<16x64xbf16>
    %c8 = arith.constant 8 : index
    %c0_31 = arith.constant 0 : index
    %c0_32 = arith.constant 0 : index
    %60 = vector.load %arg4[%c8, %c0_31, %c0_32] : memref<19x64x256xbf16, #tpu.memory_space<vmem>>, vector<1x64x256xbf16>
    %61 = vector.shape_cast %60 : vector<1x64x256xbf16> to vector<64x256xbf16>
    %cst_33 = arith.constant dense<0.000000e+00> : vector<16x256xf32>
    %62 = tpu.matmul %59, %61, %cst_33 {dimension_numbers = #tpu.dot_dimension_numbers<[1], [0], [0], [1], [0, 0, 1, 1], [], []>} : vector<16x64xbf16>, vector<64x256xbf16>, vector<16x256xf32> -> vector<16x256xf32>
    %63 = arith.addf %57, %62 : vector<16x256xf32>
    %64 = vector.extract_strided_slice %10 {offsets = [144, 0], sizes = [16, 64], strides = [1, 1]} : vector<304x64xf32> to vector<16x64xf32>
    %65 = arith.truncf %64 : vector<16x64xf32> to vector<16x64xbf16>
    %c9 = arith.constant 9 : index
    %c0_34 = arith.constant 0 : index
    %c0_35 = arith.constant 0 : index
    %66 = vector.load %arg4[%c9, %c0_34, %c0_35] : memref<19x64x256xbf16, #tpu.memory_space<vmem>>, vector<1x64x256xbf16>
    %67 = vector.shape_cast %66 : vector<1x64x256xbf16> to vector<64x256xbf16>
    %cst_36 = arith.constant dense<0.000000e+00> : vector<16x256xf32>
    %68 = tpu.matmul %65, %67, %cst_36 {dimension_numbers = #tpu.dot_dimension_numbers<[1], [0], [0], [1], [0, 0, 1, 1], [], []>} : vector<16x64xbf16>, vector<64x256xbf16>, vector<16x256xf32> -> vector<16x256xf32>
    %69 = arith.addf %63, %68 : vector<16x256xf32>
    %70 = vector.extract_strided_slice %10 {offsets = [160, 0], sizes = [16, 64], strides = [1, 1]} : vector<304x64xf32> to vector<16x64xf32>
    %71 = arith.truncf %70 : vector<16x64xf32> to vector<16x64xbf16>
    %c10 = arith.constant 10 : index
    %c0_37 = arith.constant 0 : index
    %c0_38 = arith.constant 0 : index
    %72 = vector.load %arg4[%c10, %c0_37, %c0_38] : memref<19x64x256xbf16, #tpu.memory_space<vmem>>, vector<1x64x256xbf16>
    %73 = vector.shape_cast %72 : vector<1x64x256xbf16> to vector<64x256xbf16>
    %cst_39 = arith.constant dense<0.000000e+00> : vector<16x256xf32>
    %74 = tpu.matmul %71, %73, %cst_39 {dimension_numbers = #tpu.dot_dimension_numbers<[1], [0], [0], [1], [0, 0, 1, 1], [], []>} : vector<16x64xbf16>, vector<64x256xbf16>, vector<16x256xf32> -> vector<16x256xf32>
    %75 = arith.addf %69, %74 : vector<16x256xf32>
    %76 = vector.extract_strided_slice %10 {offsets = [176, 0], sizes = [16, 64], strides = [1, 1]} : vector<304x64xf32> to vector<16x64xf32>
    %77 = arith.truncf %76 : vector<16x64xf32> to vector<16x64xbf16>
    %c11 = arith.constant 11 : index
    %c0_40 = arith.constant 0 : index
    %c0_41 = arith.constant 0 : index
    %78 = vector.load %arg4[%c11, %c0_40, %c0_41] : memref<19x64x256xbf16, #tpu.memory_space<vmem>>, vector<1x64x256xbf16>
    %79 = vector.shape_cast %78 : vector<1x64x256xbf16> to vector<64x256xbf16>
    %cst_42 = arith.constant dense<0.000000e+00> : vector<16x256xf32>
    %80 = tpu.matmul %77, %79, %cst_42 {dimension_numbers = #tpu.dot_dimension_numbers<[1], [0], [0], [1], [0, 0, 1, 1], [], []>} : vector<16x64xbf16>, vector<64x256xbf16>, vector<16x256xf32> -> vector<16x256xf32>
    %81 = arith.addf %75, %80 : vector<16x256xf32>
    %82 = vector.extract_strided_slice %10 {offsets = [192, 0], sizes = [16, 64], strides = [1, 1]} : vector<304x64xf32> to vector<16x64xf32>
    %83 = arith.truncf %82 : vector<16x64xf32> to vector<16x64xbf16>
    %c12 = arith.constant 12 : index
    %c0_43 = arith.constant 0 : index
    %c0_44 = arith.constant 0 : index
    %84 = vector.load %arg4[%c12, %c0_43, %c0_44] : memref<19x64x256xbf16, #tpu.memory_space<vmem>>, vector<1x64x256xbf16>
    %85 = vector.shape_cast %84 : vector<1x64x256xbf16> to vector<64x256xbf16>
    %cst_45 = arith.constant dense<0.000000e+00> : vector<16x256xf32>
    %86 = tpu.matmul %83, %85, %cst_45 {dimension_numbers = #tpu.dot_dimension_numbers<[1], [0], [0], [1], [0, 0, 1, 1], [], []>} : vector<16x64xbf16>, vector<64x256xbf16>, vector<16x256xf32> -> vector<16x256xf32>
    %87 = arith.addf %81, %86 : vector<16x256xf32>
    %88 = vector.extract_strided_slice %10 {offsets = [208, 0], sizes = [16, 64], strides = [1, 1]} : vector<304x64xf32> to vector<16x64xf32>
    %89 = arith.truncf %88 : vector<16x64xf32> to vector<16x64xbf16>
    %c13 = arith.constant 13 : index
    %c0_46 = arith.constant 0 : index
    %c0_47 = arith.constant 0 : index
    %90 = vector.load %arg4[%c13, %c0_46, %c0_47] : memref<19x64x256xbf16, #tpu.memory_space<vmem>>, vector<1x64x256xbf16>
    %91 = vector.shape_cast %90 : vector<1x64x256xbf16> to vector<64x256xbf16>
    %cst_48 = arith.constant dense<0.000000e+00> : vector<16x256xf32>
    %92 = tpu.matmul %89, %91, %cst_48 {dimension_numbers = #tpu.dot_dimension_numbers<[1], [0], [0], [1], [0, 0, 1, 1], [], []>} : vector<16x64xbf16>, vector<64x256xbf16>, vector<16x256xf32> -> vector<16x256xf32>
    %93 = arith.addf %87, %92 : vector<16x256xf32>
    %94 = vector.extract_strided_slice %10 {offsets = [224, 0], sizes = [16, 64], strides = [1, 1]} : vector<304x64xf32> to vector<16x64xf32>
    %95 = arith.truncf %94 : vector<16x64xf32> to vector<16x64xbf16>
    %c14 = arith.constant 14 : index
    %c0_49 = arith.constant 0 : index
    %c0_50 = arith.constant 0 : index
    %96 = vector.load %arg4[%c14, %c0_49, %c0_50] : memref<19x64x256xbf16, #tpu.memory_space<vmem>>, vector<1x64x256xbf16>
    %97 = vector.shape_cast %96 : vector<1x64x256xbf16> to vector<64x256xbf16>
    %cst_51 = arith.constant dense<0.000000e+00> : vector<16x256xf32>
    %98 = tpu.matmul %95, %97, %cst_51 {dimension_numbers = #tpu.dot_dimension_numbers<[1], [0], [0], [1], [0, 0, 1, 1], [], []>} : vector<16x64xbf16>, vector<64x256xbf16>, vector<16x256xf32> -> vector<16x256xf32>
    %99 = arith.addf %93, %98 : vector<16x256xf32>
    %100 = vector.extract_strided_slice %10 {offsets = [240, 0], sizes = [16, 64], strides = [1, 1]} : vector<304x64xf32> to vector<16x64xf32>
    %101 = arith.truncf %100 : vector<16x64xf32> to vector<16x64xbf16>
    %c15 = arith.constant 15 : index
    %c0_52 = arith.constant 0 : index
    %c0_53 = arith.constant 0 : index
    %102 = vector.load %arg4[%c15, %c0_52, %c0_53] : memref<19x64x256xbf16, #tpu.memory_space<vmem>>, vector<1x64x256xbf16>
    %103 = vector.shape_cast %102 : vector<1x64x256xbf16> to vector<64x256xbf16>
    %cst_54 = arith.constant dense<0.000000e+00> : vector<16x256xf32>
    %104 = tpu.matmul %101, %103, %cst_54 {dimension_numbers = #tpu.dot_dimension_numbers<[1], [0], [0], [1], [0, 0, 1, 1], [], []>} : vector<16x64xbf16>, vector<64x256xbf16>, vector<16x256xf32> -> vector<16x256xf32>
    %105 = arith.addf %99, %104 : vector<16x256xf32>
    %106 = vector.extract_strided_slice %10 {offsets = [256, 0], sizes = [16, 64], strides = [1, 1]} : vector<304x64xf32> to vector<16x64xf32>
    %107 = arith.truncf %106 : vector<16x64xf32> to vector<16x64xbf16>
    %c16 = arith.constant 16 : index
    %c0_55 = arith.constant 0 : index
    %c0_56 = arith.constant 0 : index
    %108 = vector.load %arg4[%c16, %c0_55, %c0_56] : memref<19x64x256xbf16, #tpu.memory_space<vmem>>, vector<1x64x256xbf16>
    %109 = vector.shape_cast %108 : vector<1x64x256xbf16> to vector<64x256xbf16>
    %cst_57 = arith.constant dense<0.000000e+00> : vector<16x256xf32>
    %110 = tpu.matmul %107, %109, %cst_57 {dimension_numbers = #tpu.dot_dimension_numbers<[1], [0], [0], [1], [0, 0, 1, 1], [], []>} : vector<16x64xbf16>, vector<64x256xbf16>, vector<16x256xf32> -> vector<16x256xf32>
    %111 = arith.addf %105, %110 : vector<16x256xf32>
    %112 = vector.extract_strided_slice %10 {offsets = [272, 0], sizes = [16, 64], strides = [1, 1]} : vector<304x64xf32> to vector<16x64xf32>
    %113 = arith.truncf %112 : vector<16x64xf32> to vector<16x64xbf16>
    %c17 = arith.constant 17 : index
    %c0_58 = arith.constant 0 : index
    %c0_59 = arith.constant 0 : index
    %114 = vector.load %arg4[%c17, %c0_58, %c0_59] : memref<19x64x256xbf16, #tpu.memory_space<vmem>>, vector<1x64x256xbf16>
    %115 = vector.shape_cast %114 : vector<1x64x256xbf16> to vector<64x256xbf16>
    %cst_60 = arith.constant dense<0.000000e+00> : vector<16x256xf32>
    %116 = tpu.matmul %113, %115, %cst_60 {dimension_numbers = #tpu.dot_dimension_numbers<[1], [0], [0], [1], [0, 0, 1, 1], [], []>} : vector<16x64xbf16>, vector<64x256xbf16>, vector<16x256xf32> -> vector<16x256xf32>
    %117 = arith.addf %111, %116 : vector<16x256xf32>
    %118 = vector.extract_strided_slice %10 {offsets = [288, 0], sizes = [16, 64], strides = [1, 1]} : vector<304x64xf32> to vector<16x64xf32>
    %119 = arith.truncf %118 : vector<16x64xf32> to vector<16x64xbf16>
    %c18 = arith.constant 18 : index
    %c0_61 = arith.constant 0 : index
    %c0_62 = arith.constant 0 : index
    %120 = vector.load %arg4[%c18, %c0_61, %c0_62] : memref<19x64x256xbf16, #tpu.memory_space<vmem>>, vector<1x64x256xbf16>
    %121 = vector.shape_cast %120 : vector<1x64x256xbf16> to vector<64x256xbf16>
    %cst_63 = arith.constant dense<0.000000e+00> : vector<16x256xf32>
    %122 = tpu.matmul %119, %121, %cst_63 {dimension_numbers = #tpu.dot_dimension_numbers<[1], [0], [0], [1], [0, 0, 1, 1], [], []>} : vector<16x64xbf16>, vector<64x256xbf16>, vector<16x256xf32> -> vector<16x256xf32>
    %123 = arith.addf %117, %122 : vector<16x256xf32>
    %c0_64 = arith.constant 0 : index
    %c0_65 = arith.constant 0 : index
    %124 = vector.load %arg5[%c0_64, %c0_65] : memref<1x256xf32, #tpu.memory_space<vmem>>, vector<1x256xf32>
    %125 = vector.broadcast %124 : vector<1x256xf32> to vector<16x256xf32>
    %126 = arith.addf %123, %125 : vector<16x256xf32>
    %cst_66 = arith.constant 0.000000e+00 : f32
    %127 = vector.broadcast %cst_66 : f32 to vector<16x256xf32>
    %128 = arith.maximumf %126, %127 : vector<16x256xf32>
    %129 = arith.truncf %128 : vector<16x256xf32> to vector<16x256xbf16>
    %c0_67 = arith.constant 0 : index
    %c0_68 = arith.constant 0 : index
    %130 = vector.load %arg6[%c0_67, %c0_68] : memref<256x128xbf16, #tpu.memory_space<vmem>>, vector<256x128xbf16>
    %cst_69 = arith.constant dense<0.000000e+00> : vector<16x128xf32>
    %131 = tpu.matmul %129, %130, %cst_69 {dimension_numbers = #tpu.dot_dimension_numbers<[1], [0], [0], [1], [0, 0, 1, 1], [], []>} : vector<16x256xbf16>, vector<256x128xbf16>, vector<16x128xf32> -> vector<16x128xf32>
    %c0_70 = arith.constant 0 : index
    %c0_71 = arith.constant 0 : index
    %132 = vector.load %arg7[%c0_70, %c0_71] : memref<1x128xf32, #tpu.memory_space<vmem>>, vector<1x128xf32>
    %133 = vector.broadcast %132 : vector<1x128xf32> to vector<16x128xf32>
    %134 = arith.addf %131, %133 : vector<16x128xf32>
    %cst_72 = arith.constant 0.000000e+00 : f32
    %135 = vector.broadcast %cst_72 : f32 to vector<16x128xf32>
    %136 = arith.maximumf %134, %135 : vector<16x128xf32>
    %137 = arith.truncf %136 : vector<16x128xf32> to vector<16x128xbf16>
    %c0_73 = arith.constant 0 : index
    %c0_74 = arith.constant 0 : index
    %138 = vector.load %arg8[%c0_73, %c0_74] : memref<128x128xbf16, #tpu.memory_space<vmem>>, vector<128x128xbf16>
    %cst_75 = arith.constant dense<0.000000e+00> : vector<16x128xf32>
    %139 = tpu.matmul %137, %138, %cst_75 {dimension_numbers = #tpu.dot_dimension_numbers<[1], [0], [0], [1], [0, 0, 1, 1], [], []>} : vector<16x128xbf16>, vector<128x128xbf16>, vector<16x128xf32> -> vector<16x128xf32>
    %c0_76 = arith.constant 0 : index
    %c0_77 = arith.constant 0 : index
    %140 = vector.load %arg9[%c0_76, %c0_77] : memref<1x128xf32, #tpu.memory_space<vmem>>, vector<1x128xf32>
    %141 = vector.broadcast %140 : vector<1x128xf32> to vector<16x128xf32>
    %142 = arith.addf %139, %141 : vector<16x128xf32>
    %cst_78 = arith.constant dense<0xFF800000> : vector<16xf32>
    %143 = vector.multi_reduction <maximumf>, %142, %cst_78 [1] : vector<16x128xf32> to vector<16xf32>
    %144 = vector.shape_cast %143 : vector<16xf32> to vector<16x1xf32>
    %145 = vector.broadcast %144 : vector<16x1xf32> to vector<16x128xf32>
    %146 = arith.subf %142, %145 : vector<16x128xf32>
    %147 = math.exp %146 : vector<16x128xf32>
    %cst_79 = arith.constant dense<0.000000e+00> : vector<16xf32>
    %148 = vector.multi_reduction <add>, %147, %cst_79 [1] : vector<16x128xf32> to vector<16xf32>
    %149 = vector.shape_cast %148 : vector<16xf32> to vector<16x1xf32>
    %150 = tpu.reciprocal %149 {approx = true} : vector<16x1xf32> -> vector<16x1xf32>
    %151 = vector.broadcast %150 : vector<16x1xf32> to vector<16x128xf32>
    %152 = arith.mulf %147, %151 : vector<16x128xf32>
    %c0_80 = arith.constant 0 : index
    %c0_81 = arith.constant 0 : index
    %153 = vector.load %arg10[%c0_80, %c0_81] : memref<16x128xf32, #tpu.memory_space<vmem>>, vector<16x128xf32>
    tpu.vector_store %arg10[%c0_80, %c0_81], %152 {strides = array<i32>} : memref<16x128xf32, #tpu.memory_space<vmem>>, vector<16x128xf32>,
    return
  }
  func.func @transform_0(%arg0: i32) -> (i32, i32) {
    %c0_i32 = arith.constant 0 : i32
    %c0_i32_0 = arith.constant 0 : i32
    return %arg0, %c0_i32 : i32, i32
  }
  func.func @transform_1(%arg0: i32) -> (i32, i32) {
    %c0_i32 = arith.constant 0 : i32
    %c0_i32_0 = arith.constant 0 : i32
    %c0_i32_1 = arith.constant 0 : i32
    return %c0_i32, %c0_i32_0 : i32, i32
  }
  func.func @transform_2(%arg0: i32) -> (i32, i32) {
    %c0_i32 = arith.constant 0 : i32
    %c0_i32_0 = arith.constant 0 : i32
    %c0_i32_1 = arith.constant 0 : i32
    return %c0_i32, %c0_i32_0 : i32, i32
  }
  func.func @transform_3(%arg0: i32) -> (i32, i32, i32) {
    %c0_i32 = arith.constant 0 : i32
    %c0_i32_0 = arith.constant 0 : i32
    %c0_i32_1 = arith.constant 0 : i32
    %c0_i32_2 = arith.constant 0 : i32
    return %c0_i32, %c0_i32_0, %c0_i32_1 : i32, i32, i32
  }
  func.func @transform_4(%arg0: i32) -> (i32, i32) {
    %c0_i32 = arith.constant 0 : i32
    %c0_i32_0 = arith.constant 0 : i32
    %c0_i32_1 = arith.constant 0 : i32
    return %c0_i32, %c0_i32_0 : i32, i32
  }
  func.func @transform_5(%arg0: i32) -> (i32, i32) {
    %c0_i32 = arith.constant 0 : i32
    %c0_i32_0 = arith.constant 0 : i32
    %c0_i32_1 = arith.constant 0 : i32
    return %c0_i32, %c0_i32_0 : i32, i32
  }
  func.func @transform_6(%arg0: i32) -> (i32, i32) {
    %c0_i32 = arith.constant 0 : i32
    %c0_i32_0 = arith.constant 0 : i32
    %c0_i32_1 = arith.constant 0 : i32
    return %c0_i32, %c0_i32_0 : i32, i32
  }
  func.func @transform_7(%arg0: i32) -> (i32, i32) {
    %c0_i32 = arith.constant 0 : i32
    %c0_i32_0 = arith.constant 0 : i32
    %c0_i32_1 = arith.constant 0 : i32
    return %c0_i32, %c0_i32_0 : i32, i32
  }
  func.func @transform_8(%arg0: i32) -> (i32, i32) {
    %c0_i32 = arith.constant 0 : i32
    %c0_i32_0 = arith.constant 0 : i32
    %c0_i32_1 = arith.constant 0 : i32
    return %c0_i32, %c0_i32_0 : i32, i32
  }
  func.func @transform_9(%arg0: i32) -> (i32, i32) {
    %c0_i32 = arith.constant 0 : i32
    %c0_i32_0 = arith.constant 0 : i32
    return %arg0, %c0_i32 : i32, i32
  }
}

</mosaic_0001>

<bundles_post_ra>
// kernel: conv_network_forward.1
= control target key start
LH: loop header
LB: loop body
LE: loop exit
PB: predicated region body
PF: predicated region fallthrough
CT: control target
= control target key end

     0   :  { %14 = vsyncpa [#allocation3], 0  ;;  %s4510_s12 = smov [#allocation2]   ;;  %s4511_s14 = smov 128   ;;  %s5488_s0 = inlined_call_operand.vmem [shape: bf16[320,300], index: 0, kind: input, shape index: {}]   ;;  %s5489_s1 = inlined_call_operand.vmem [shape: bf16[300,128], index: 1, kind: input, shape index: {}]   ;;  %s5490_s2 = inlined_call_operand.vmem [shape: f32[1,64], index: 2, kind: input, shape index: {}]   ;;  %s5491_s3 = inlined_call_operand.hbm [shape: bf16[19,64,256], index: 3, kind: input, shape index: {}]   ;;  %s5492_s4 = inlined_call_operand.vmem [shape: f32[1,256], index: 4, kind: input, shape index: {}]   ;;  %s5493_s5 = inlined_call_operand.vmem [shape: bf16[256,128], index: 5, kind: input, shape index: {}]   ;;  %s5494_s6 = inlined_call_operand.vmem [shape: f32[1,128], index: 6, kind: input, shape index: {}]   ;;  %s5495_s7 = inlined_call_operand.vmem [shape: bf16[128,128], index: 7, kind: input, shape index: {}]   ;;  %s5496_s8 = inlined_call_operand.vmem [shape: f32[1,128], index: 8, kind: input, shape index: {}]   ;;  %s5497_s9 = inlined_call_operand.vmem [shape: f32[16,128], index: 9, kind: output, shape index: {}]  }
   0x1   :  { %s25_s11 = sshll.u32 %s5491_s3, 4  ;;  %s27_s13 = sshll.u32 %s4510_s12, 4  ;;  %s26_s11 = int_to_ptr.hbm [resolvable:$true] %s25_s11  ;;  %s28_s13 = int_to_ptr.vmem [resolvable:$true] %s27_s13 }
   0x2   :  { %s4512_s15 = smov 8  }
   0x3   :  { %33 = dma.hbm_to_vmem [thread:$0]  %s26_s11, 19456, %s28_s13, [#allocation3], %s4511_s14, %s4511_s14, %s4512_s15  }
   0x4   :  { %4508 = dma.done.wait [#allocation3], 19456  }
   0x5   :  { %4509 = vsyncadd [#allocation3], 4294947840  ;;  %v4280_v0 = vld [vmem:[%s5489_s1 + $0x38] sm:$0xff]  ;;  %v4279_v2 = vld [vmem:[%s5489_s1 + $0x30] sm:$0xff]  ;;  %vm641_vm0 = vcmask 1045504   ;;  %vm580_vm1 = vcmask 359424  }
   0x6   :  { %v4288_v1 = vld [vmem:[%s5489_s1 + $0x78] sm:$0xff]  ;;  %645 = vmatpush.bf16.msra.mxu0 %v4280_v0  ;;  %v4287_v3 = vld [vmem:[%s5489_s1 + $0x70] sm:$0xff]  ;;  %v4278_v8 = vld [vmem:[%s5489_s1 + $0x28] sm:$0xff]  ;;  %s4513_s21 = smov 64   ;;  %vm1301_vm2 = vcmask 523264  }
   0x7   :  { %754 = vmatpush.bf16.msra.mxu1 %v4288_v1  ;;  %v3449_v4 = vld [vmem:[%s5489_s1 + $0x90] sm:$0xf]  ;;  %v4291_v5 = vld [vmem:[%s5489_s1 + $0x90] sm:$0x30]  ;;  %v4286_v9 = vld [vmem:[%s5489_s1 + $0x68] sm:$0xff] }
   0x8   :  { %v3450_v6 = vor.u32 %v4291_v5, %v3449_v4  ;;  %v4290_v10 = vld [vmem:[%s5489_s1 + $0x88] sm:$0xff]  ;;  %v4277_v11 = vld [vmem:[%s5489_s1 + $0x20] sm:$0xff]  ;;  %v4215_v15 = vld [vmem:[%s5488_s0 + $0x10] sm:$0xf0] }
   0x9   :  { %v4285_v12 = vld [vmem:[%s5489_s1 + $0x60] sm:$0xff]  ;;  %v3145_v14 = vld [vmem:[%s5488_s0 + $0x8] sm:$0xf]  ;;  %v4276_v16 = vld [vmem:[%s5489_s1 + $0x18] sm:$0xff] }
   0xa   :  { %v643_v7 = vsel %vm641_vm0, %v3450_v6, 0  ;;  %646 = vmatpush.bf16.msra.mxu0 %v4279_v2  ;;  %v4289_v13 = vld [vmem:[%s5489_s1 + $0x80] sm:$0xff]  ;;  %v4284_v17 = vld [vmem:[%s5489_s1 + $0x58] sm:$0xff]  ;;  %v3146_v18 = vor.u32 %v4215_v15, %v3145_v14  ;;  %v4275_v19 = vld [vmem:[%s5489_s1 + $0x10] sm:$0xff] }
   0xb   :  { %755 = vmatpush.bf16.msra.mxu1 %v4287_v3  ;;  %868 = vmatpush.bf16.msra.mxu2 %v643_v7  ;;  %v4283_v20 = vld [vmem:[%s5489_s1 + $0x50] sm:$0xff]  ;;  %v4274_v21 = vld [vmem:[%s5489_s1 + $0x8] sm:$0xff]  ;;  %v4273_v23 = vld [vmem:[%s5489_s1] sm:$0xff] }
   0xc   :  { %v4282_v22 = vld [vmem:[%s5489_s1 + $0x48] sm:$0xff]  ;;  %v4281_v24 = vld [vmem:[%s5489_s1 + $0x40] sm:$0xff]  ;;  %v3139_v28 = vld [vmem:[%s5488_s0 + $0xc] sm:$0xf0] }
   0xd   :  { %v3137_v25 = vld [vmem:[%s5488_s0] sm:$0xf]  ;;  %v4214_v26 = vld [vmem:[%s5488_s0 + $0x8] sm:$0xf0]  ;;  %v4213_v27 = vld [vmem:[%s5488_s0 + $0x4] sm:$0xf] }
   0xe   :  { %647 = vmatpush.bf16.msra.mxu0 %v4278_v8  ;;  %v3157_v29 = vld [vmem:[%s5488_s0 + $0x20] sm:$0xf]  ;;  %v4218_v30 = vld [vmem:[%s5488_s0 + $0x28] sm:$0xf0]  ;;  %v3138_v31 = vor.u32 %v4214_v26, %v3137_v25  ;;  %v3142_v32 = vor.u32 %v4213_v27, %v3139_v28  ;;  %v3149_v34 = vld [vmem:[%s5488_s0 + $0x18] sm:$0xf] }
   0xf   :  { %756 = vmatpush.bf16.msra.mxu1 %v4286_v9  ;;  %869 = vmatpush.bf16.msra.mxu2 %v4290_v10  ;;  %v3158_v33 = vor.u32 %v4218_v30, %v3157_v29  ;;  %v4217_v35 = vld [vmem:[%s5488_s0 + $0x20] sm:$0xf0]  ;;  %v4216_v36 = vld [vmem:[%s5488_s0 + $0x1c] sm:$0xf]  ;;  %v3151_v37 = vld [vmem:[%s5488_s0 + $0x24] sm:$0xf0] }
  0x10   :  { %v3169_v38 = vld [vmem:[%s5488_s0 + $0x38] sm:$0xf]  ;;  %v4221_v39 = vld [vmem:[%s5488_s0 + $0x40] sm:$0xf0]  ;;  %v3150_v40 = vor.u32 %v4217_v35, %v3149_v34  ;;  %v3154_v41 = vor.u32 %v4216_v36, %v3151_v37  ;;  %v3161_v43 = vld [vmem:[%s5488_s0 + $0x30] sm:$0xf] }
  0x11   :  { %v3170_v42 = vor.u32 %v4221_v39, %v3169_v38  ;;  %v4220_v44 = vld [vmem:[%s5488_s0 + $0x38] sm:$0xf0]  ;;  %v4219_v45 = vld [vmem:[%s5488_s0 + $0x34] sm:$0xf]  ;;  %v3163_v46 = vld [vmem:[%s5488_s0 + $0x3c] sm:$0xf0] }
  0x12   :  { %648 = vmatpush.bf16.msra.mxu0 %v4277_v11  ;;  %v3181_v47 = vld [vmem:[%s5488_s0 + $0x50] sm:$0xf]  ;;  %v4224_v48 = vld [vmem:[%s5488_s0 + $0x58] sm:$0xf0]  ;;  %v3162_v49 = vor.u32 %v4220_v44, %v3161_v43  ;;  %v3166_v50 = vor.u32 %v4219_v45, %v3163_v46  ;;  %v3173_v52 = vld [vmem:[%s5488_s0 + $0x48] sm:$0xf] }
  0x13   :  { %757 = vmatpush.bf16.msra.mxu1 %v4285_v12  ;;  %870 = vmatpush.bf16.msra.mxu2 %v4289_v13  ;;  %v3182_v51 = vor.u32 %v4224_v48, %v3181_v47  ;;  %v4223_v53 = vld [vmem:[%s5488_s0 + $0x50] sm:$0xf0]  ;;  %v4222_v54 = vld [vmem:[%s5488_s0 + $0x4c] sm:$0xf]  ;;  %v3175_v55 = vld [vmem:[%s5488_s0 + $0x54] sm:$0xf0] }
  0x14   :  { %v3193_v56 = vld [vmem:[%s5488_s0 + $0x68] sm:$0xf]  ;;  %v4227_v57 = vld [vmem:[%s5488_s0 + $0x70] sm:$0xf0]  ;;  %v3174_v58 = vor.u32 %v4223_v53, %v3173_v52  ;;  %v3178_v59 = vor.u32 %v4222_v54, %v3175_v55  ;;  %v3185_v61 = vld [vmem:[%s5488_s0 + $0x60] sm:$0xf] }
  0x15   :  { %v3194_v60 = vor.u32 %v4227_v57, %v3193_v56  ;;  %v4226_v62 = vld [vmem:[%s5488_s0 + $0x68] sm:$0xf0]  ;;  %v4225_v63 = vld [vmem:[%s5488_s0 + $0x64] sm:$0xf]  ;;  %v3187_v0 = vld [vmem:[%s5488_s0 + $0x6c] sm:$0xf0] }
  0x16   :  { %649 = vmatpush.bf16.msra.mxu0 %v4276_v16  ;;  %3451 = vmatmul.msk.bf16.vlgmr.msra.gmra.mxu2 %vm580_vm1, %v3146_v18  ;;  %v3205_v1 = vld [vmem:[%s5488_s0 + $0x80] sm:$0xf]  ;;  %v4230_v2 = vld [vmem:[%s5488_s0 + $0x88] sm:$0xf0]  ;;  %v3186_v3 = vor.u32 %v4226_v62, %v3185_v61  ;;  %v3190_v4 = vor.u32 %v4225_v63, %v3187_v0  ;;  %v3197_v6 = vld [vmem:[%s5488_s0 + $0x78] sm:$0xf] }
  0x17   :  { %758 = vmatpush.bf16.msra.mxu1 %v4284_v17  ;;  %v3206_v5 = vor.u32 %v4230_v2, %v3205_v1  ;;  %v4229_v7 = vld [vmem:[%s5488_s0 + $0x80] sm:$0xf0]  ;;  %v4228_v8 = vld [vmem:[%s5488_s0 + $0x7c] sm:$0xf]  ;;  %v3199_v9 = vld [vmem:[%s5488_s0 + $0x84] sm:$0xf0] }
  0x18   :  { %v3217_v10 = vld [vmem:[%s5488_s0 + $0x98] sm:$0xf]  ;;  %v4233_v11 = vld [vmem:[%s5488_s0 + $0xa0] sm:$0xf0]  ;;  %v3198_v12 = vor.u32 %v4229_v7, %v3197_v6  ;;  %v3202_v13 = vor.u32 %v4228_v8, %v3199_v9  ;;  %v3209_v15 = vld [vmem:[%s5488_s0 + $0x90] sm:$0xf] }
  0x19   :  { %v3218_v14 = vor.u32 %v4233_v11, %v3217_v10  ;;  %v4232_v16 = vld [vmem:[%s5488_s0 + $0x98] sm:$0xf0]  ;;  %v4231_v17 = vld [vmem:[%s5488_s0 + $0x94] sm:$0xf]  ;;  %v3211_v18 = vld [vmem:[%s5488_s0 + $0x9c] sm:$0xf0] }
  0x1a   :  { %650 = vmatpush.bf16.msra.mxu0 %v4275_v19  ;;  %v3229_v19 = vld [vmem:[%s5488_s0 + $0xb0] sm:$0xf]  ;;  %v4235_v25 = vld [vmem:[%s5488_s0 + $0xb0] sm:$0xf0]  ;;  %v4234_v26 = vld [vmem:[%s5488_s0 + $0xac] sm:$0xf] }
  0x1b   :  { %759 = vmatpush.bf16.msra.mxu1 %v4283_v20  ;;  %v4236_v20 = vld [vmem:[%s5488_s0 + $0xb8] sm:$0xf0]  ;;  %v3223_v27 = vld [vmem:[%s5488_s0 + $0xb4] sm:$0xf0]  ;;  %v3241_v28 = vld [vmem:[%s5488_s0 + $0xc8] sm:$0xf] }
  0x1c   :  { %v4239_v29 = vld [vmem:[%s5488_s0 + $0xd0] sm:$0xf0]  ;;  %v3233_v34 = vld [vmem:[%s5488_s0 + $0xc0] sm:$0xf]  ;;  %v4238_v35 = vld [vmem:[%s5488_s0 + $0xc8] sm:$0xf0] }
  0x1d   :  { %v4237_v36 = vld [vmem:[%s5488_s0 + $0xc4] sm:$0xf]  ;;  %v3235_v37 = vld [vmem:[%s5488_s0 + $0xcc] sm:$0xf0]  ;;  %v3253_v38 = vld [vmem:[%s5488_s0 + $0xe0] sm:$0xf] }
  0x1e   :  { %651 = vmatpush.bf16.msra.mxu0 %v4274_v21  ;;  %v3210_v21 = vor.u32 %v4232_v16, %v3209_v15  ;;  %v4242_v39 = vld [vmem:[%s5488_s0 + $0xe8] sm:$0xf0]  ;;  %v3245_v52 = vld [vmem:[%s5488_s0 + $0xd8] sm:$0xf]  ;;  %v4241_v54 = vld [vmem:[%s5488_s0 + $0xe0] sm:$0xf0] }
  0x1f   :  { %760 = vmatpush.bf16.msra.mxu1 %v4282_v22  ;;  %v3214_v22 = vor.u32 %v4231_v17, %v3211_v18  ;;  %v3254_v46 = vor.u32 %v4242_v39, %v3253_v38  ;;  %v4240_v55 = vld [vmem:[%s5488_s0 + $0xdc] sm:$0xf]  ;;  %v3247_v56 = vld [vmem:[%s5488_s0 + $0xe4] sm:$0xf0]  ;;  %v3265_v57 = vld [vmem:[%s5488_s0 + $0xf8] sm:$0xf] }
  0x20   :  { %v3257_v8 = vld [vmem:[%s5488_s0 + $0xf0] sm:$0xf]  ;;  %v4244_v9 = vld [vmem:[%s5488_s0 + $0xf8] sm:$0xf0]  ;;  %v4243_v10 = vld [vmem:[%s5488_s0 + $0xf4] sm:$0xf] }
  0x21   :  { %v3259_v11 = vld [vmem:[%s5488_s0 + $0xfc] sm:$0xf0] }
  0x22   :  { %652 = vmatpush.bf16.msra.mxu0 %v4273_v23  ;;  %v3230_v23 = vor.u32 %v4236_v20, %v3229_v19  ;;  %v3262_v15 = vor.u32 %v4243_v10, %v3259_v11  ;;  %v4257_v10 = vld [vmem:[%s5488_s0 + $0x160] sm:$0xf0] }
  0x23   :  { %761 = vmatpush.bf16.msra.mxu1 %v4281_v24  ;;  %v3221_v24 = vld [vmem:[%s5488_s0 + $0xa8] sm:$0xf] }
  0x24   :  { %v3222_v30 = vor.u32 %v4235_v25, %v3221_v24 }
  0x25   :  { %653 = vmatmul.bf16.vlgmr.msra.gmra.mxu0 %v3138_v31  ;;  %v3226_v31 = vor.u32 %v4234_v26, %v3223_v27  ;;  %v3269_v27 = vld [vmem:[%s5488_s0 + $0x108] sm:$0xf] }
  0x26   :  { %762 = vmatmul.bf16.vlgmr.msra.gmra.mxu1 %v3142_v32  ;;  %3452 = vmatmul.msk.bf16.gmra.mxu2 %vm580_vm1, %v3158_v33  ;;  %v3242_v32 = vor.u32 %v4239_v29, %v3241_v28  ;;  %v4247_v28 = vld [vmem:[%s5488_s0 + $0x110] sm:$0xf0]  ;;  %v4246_v29 = vld [vmem:[%s5488_s0 + $0x10c] sm:$0xf] }
  0x35   :  { %658 = vmatmul.bf16.gmra.mxu0 %v3150_v40  ;;  %v3234_v40 = vor.u32 %v4238_v35, %v3233_v34 }
  0x36   :  { %767 = vmatmul.bf16.gmra.mxu1 %v3154_v41  ;;  %3453 = vmatmul.msk.bf16.gmra.mxu2 %vm580_vm1, %v3170_v42  ;;  %v3238_v41 = vor.u32 %v4237_v36, %v3235_v37 }
  0x45   :  { %663 = vmatmul.bf16.gmra.mxu0 %v3162_v49 }
  0x46   :  { %772 = vmatmul.bf16.gmra.mxu1 %v3166_v50  ;;  %3454 = vmatmul.msk.bf16.gmra.mxu2 %vm580_vm1, %v3182_v51 }
  0x55   :  { %668 = vmatmul.bf16.gmra.mxu0 %v3174_v58  ;;  %v4245_v58 = vld [vmem:[%s5488_s0 + $0x100] sm:$0xf0] }
  0x56   :  { %777 = vmatmul.bf16.gmra.mxu1 %v3178_v59  ;;  %3455 = vmatmul.msk.bf16.gmra.mxu2 %vm580_vm1, %v3194_v60  ;;  %v3246_v59 = vor.u32 %v4241_v54, %v3245_v52  ;;  %v3250_v60 = vor.u32 %v4240_v55, %v3247_v56  ;;  %v3266_v1 = vor.u32 %v4245_v58, %v3265_v57  ;;  %v4254_v52 = vld [vmem:[%s5488_s0 + $0x148] sm:$0xf0] }
  0x65   :  { %673 = vmatmul.bf16.gmra.mxu0 %v3186_v3 }
  0x66   :  { %782 = vmatmul.bf16.gmra.mxu1 %v3190_v4  ;;  %3456 = vmatmul.msk.bf16.gmra.mxu2 %vm580_vm1, %v3206_v5 }
  0x75   :  { %678 = vmatmul.bf16.gmra.mxu0 %v3198_v12  ;;  %v3277_v12 = vld [vmem:[%s5488_s0 + $0x110] sm:$0xf] }
  0x76   :  { %787 = vmatmul.bf16.gmra.mxu1 %v3202_v13  ;;  %3457 = vmatmul.msk.bf16.gmra.mxu2 %vm580_vm1, %v3218_v14  ;;  %v4248_v13 = vld [vmem:[%s5488_s0 + $0x118] sm:$0xf0]  ;;  %v3258_v14 = vor.u32 %v4244_v9, %v3257_v8  ;;  %v3295_v8 = vld [vmem:[%s5488_s0 + $0x144] sm:$0xf0]  ;;  %v3313_v9 = vld [vmem:[%s5488_s0 + $0x158] sm:$0xf] }
  0x77   :  { %v3278_v20 = vor.u32 %v4248_v13, %v3277_v12 }
  0x85   :  { %683 = vmatmul.bf16.gmra.mxu0 %v3210_v21 }
  0x86   :  { %792 = vmatmul.bf16.gmra.mxu1 %v3214_v22  ;;  %3458 = vmatmul.msk.bf16.gmra.mxu2 %vm580_vm1, %v3230_v23 }
  0x95   :  { %688 = vmatmul.bf16.gmra.mxu0 %v3222_v30  ;;  %v3271_v30 = vld [vmem:[%s5488_s0 + $0x114] sm:$0xf0] }
  0x96   :  { %797 = vmatmul.bf16.gmra.mxu1 %v3226_v31  ;;  %3459 = vmatmul.msk.bf16.gmra.mxu2 %vm580_vm1, %v3242_v32  ;;  %v3289_v31 = vld [vmem:[%s5488_s0 + $0x128] sm:$0xf]  ;;  %v4251_v32 = vld [vmem:[%s5488_s0 + $0x130] sm:$0xf0]  ;;  %v3274_v34 = vor.u32 %v4246_v29, %v3271_v30  ;;  %v3307_v29 = vld [vmem:[%s5488_s0 + $0x15c] sm:$0xf0] }
  0x97   :  { %v3290_v39 = vor.u32 %v4251_v32, %v3289_v31  ;;  %v3325_v30 = vld [vmem:[%s5488_s0 + $0x170] sm:$0xf]  ;;  %v4260_v31 = vld [vmem:[%s5488_s0 + $0x178] sm:$0xf0] }
  0x99   :  { %v872_v33 = vpop.f32.mrf.mxu2 }
  0xa1   :  { %v874_v45 = vpop.f32.mrf.mxu2 }
  0xa2   :  { %v654_v42 = vpop.f32.mrf.mxu0 }
  0xa3   :  { %v763_v43 = vpop.f32.mrf.mxu1 }
  0xa4   :  { %v764_v44 = vadd.f32 %v763_v43, %v654_v42 }
  0xa5   :  { %693 = vmatmul.bf16.gmra.mxu0 %v3234_v40 }
  0xa6   :  { %802 = vmatmul.bf16.gmra.mxu1 %v3238_v41  ;;  %v4804_v47 = vadd.f32 %v872_v33, %v764_v44  ;;  %3460 = vmatmul.msk.bf16.gmra.mxu2 %vm580_vm1, %v3254_v46  ;;  %v3270_v33 = vor.u32 %v4247_v28, %v3269_v27  ;;  %v3281_v46 = vld [vmem:[%s5488_s0 + $0x120] sm:$0xf]  ;;  %v4256_v27 = vld [vmem:[%s5488_s0 + $0x158] sm:$0xf0]  ;;  %v4255_v28 = vld [vmem:[%s5488_s0 + $0x154] sm:$0xf] }
  0xa9   :  { %v877_v51 = vpop.f32.mrf.mxu2 }
  0xaa   :  { %v656_v48 = vpop.f32.mrf.mxu0 }
  0xab   :  { %v765_v49 = vpop.f32.mrf.mxu1 }
  0xac   :  { %v766_v50 = vadd.f32 %v765_v49, %v656_v48  ;;  %v4250_v48 = vld [vmem:[%s5488_s0 + $0x128] sm:$0xf0]  ;;  %v4249_v49 = vld [vmem:[%s5488_s0 + $0x124] sm:$0xf] }
  0xad   :  { %v3282_v54 = vor.u32 %v4250_v48, %v3281_v46  ;;  %v3317_v48 = vld [vmem:[%s5488_s0 + $0x168] sm:$0xf] }
  0xae   :  { %v4810_v53 = vadd.f32 %v874_v45, %v766_v50  ;;  %v3283_v50 = vld [vmem:[%s5488_s0 + $0x12c] sm:$0xf0] }
  0xaf   :  { %v3286_v55 = vor.u32 %v4249_v49, %v3283_v50  ;;  %v4259_v49 = vld [vmem:[%s5488_s0 + $0x170] sm:$0xf0]  ;;  %v4258_v50 = vld [vmem:[%s5488_s0 + $0x16c] sm:$0xf] }
  0xb1   :  { %v879_v0 = vpop.f32.mrf.mxu2 }
  0xb2   :  { %v659_v61 = vpop.f32.mrf.mxu0 }
  0xb3   :  { %v768_v62 = vpop.f32.mrf.mxu1 }
  0xb4   :  { %v769_v63 = vadd.f32 %v768_v62, %v659_v61 }
  0xb5   :  { %698 = vmatmul.bf16.gmra.mxu0 %v3246_v59 }
  0xb6   :  { %807 = vmatmul.bf16.gmra.mxu1 %v3250_v60  ;;  %v4827_v2 = vadd.f32 %v877_v51, %v769_v63  ;;  %3461 = vmatmul.msk.bf16.gmra.mxu2 %vm580_vm1, %v3266_v1  ;;  %v3301_v51 = vld [vmem:[%s5488_s0 + $0x140] sm:$0xf] }
  0xb7   :  { %v3302_v60 = vor.u32 %v4254_v52, %v3301_v51  ;;  %v3319_v51 = vld [vmem:[%s5488_s0 + $0x174] sm:$0xf0]  ;;  %v3337_v52 = vld [vmem:[%s5488_s0 + $0x188] sm:$0xf] }
  0xb8   :  { %1010 = vrot.lane.b32.xlu1 %v4827_v2, %s4513_s21 }
  0xb9   :  { %v882_v6 = vpop.f32.mrf.mxu2 }
  0xba   :  { %v661_v3 = vpop.f32.mrf.mxu0 }
  0xbb   :  { %v770_v4 = vpop.f32.mrf.mxu1 }
  0xbc   :  { %v771_v5 = vadd.f32 %v770_v4, %v661_v3  ;;  %v3293_v4 = vld [vmem:[%s5488_s0 + $0x138] sm:$0xf] }
  0xbe   :  { %v4832_v7 = vadd.f32 %v879_v0, %v771_v5  ;;  %v4253_v5 = vld [vmem:[%s5488_s0 + $0x140] sm:$0xf0] }
  0xbf   :  { %v3294_v11 = vor.u32 %v4253_v5, %v3293_v4 }
  0xc0   :  { %1012 = vrot.lane.b32.xlu1 %v4832_v7, %s4513_s21 }
  0xc1   :  { %v884_v19 = vpop.f32.mrf.mxu2 }
  0xc2   :  { %v664_v16 = vpop.f32.mrf.mxu0 }
  0xc3   :  { %v773_v17 = vpop.f32.mrf.mxu1 }
  0xc4   :  { %v774_v18 = vadd.f32 %v773_v17, %v664_v16  ;;  %v3314_v17 = vor.u32 %v4257_v10, %v3313_v9  ;;  %v3489_v10 = vld [vmem:[#allocation2 + $0x60] sm:$0xf] }
  0xc5   :  { %703 = vmatmul.bf16.gmra.mxu0 %v3258_v14 }
  0xc6   :  { %812 = vmatmul.bf16.gmra.mxu1 %v3262_v15  ;;  %v4854_v21 = vadd.f32 %v882_v6, %v774_v18  ;;  %3462 = vmatmul.msk.bf16.gmra.mxu2 %vm580_vm1, %v3278_v20  ;;  %v4252_v6 = vld [vmem:[%s5488_s0 + $0x13c] sm:$0xf] }
  0xc7   :  { %v3298_v12 = vor.u32 %v4252_v6, %v3295_v8 }
  0xc8   :  { %1014 = vrot.lane.b32.xlu0 %v4854_v21, %s4513_s21 }
  0xc9   :  { %v887_v25 = vpop.f32.mrf.mxu2 }
  0xca   :  { %v666_v22 = vpop.f32.mrf.mxu0 }
  0xcb   :  { %v775_v23 = vpop.f32.mrf.mxu1 }
  0xcc   :  { %v776_v24 = vadd.f32 %v775_v23, %v666_v22 }
  0xce   :  { %v4859_v26 = vadd.f32 %v884_v19, %v776_v24 }
  0xd0   :  { %1016 = vrot.lane.b32.xlu0 %v4859_v26, %s4513_s21 }
  0xd1   :  { %v889_v38 = vpop.f32.mrf.mxu2 }
  0xd2   :  { %v669_v35 = vpop.f32.mrf.mxu0 }
  0xd3   :  { %v778_v36 = vpop.f32.mrf.mxu1 }
  0xd4   :  { %v779_v37 = vadd.f32 %v778_v36, %v669_v35 }
  0xd5   :  { %708 = vmatmul.bf16.gmra.mxu0 %v3270_v33  ;;  %v3310_v33 = vor.u32 %v4255_v28, %v3307_v29 }
  0xd6   :  { %v4881_v40 = vadd.f32 %v887_v25, %v779_v37  ;;  %817 = vmatmul.bf16.gmra.mxu1 %v3274_v34  ;;  %3463 = vmatmul.msk.bf16.gmra.mxu2 %vm580_vm1, %v3290_v39  ;;  %v3305_v25 = vld [vmem:[%s5488_s0 + $0x150] sm:$0xf] }
  0xd7   :  { %v3306_v32 = vor.u32 %v4256_v27, %v3305_v25 }
  0xd8   :  { %1018 = vrot.lane.b32.xlu2 %v4881_v40, %s4513_s21 }
  0xd9   :  { %v892_v44 = vpop.f32.mrf.mxu2 }
  0xda   :  { %v671_v41 = vpop.f32.mrf.mxu0 }
  0xdb   :  { %v780_v42 = vpop.f32.mrf.mxu1 }
  0xdc   :  { %v781_v43 = vadd.f32 %v780_v42, %v671_v41 }
  0xde   :  { %v4886_v45 = vadd.f32 %v889_v38, %v781_v43  ;;  %v3326_v38 = vor.u32 %v4260_v31, %v3325_v30 }
  0xe0   :  { %1020 = vrot.lane.b32.xlu2 %v4886_v45, %s4513_s21 }
  0xe1   :  { %v894_v59 = vpop.f32.mrf.mxu2 }
  0xe2   :  { %v674_v56 = vpop.f32.mrf.mxu0 }
  0xe3   :  { %v783_v57 = vpop.f32.mrf.mxu1 }
  0xe4   :  { %v784_v58 = vadd.f32 %v783_v57, %v674_v56  ;;  %v3322_v56 = vor.u32 %v4258_v50, %v3319_v51  ;;  %v4304_v51 = vld [vmem:[#allocation2 + $0x64] sm:$0xf] }
  0xe5   :  { %713 = vmatmul.bf16.gmra.mxu0 %v3282_v54  ;;  %v4263_v54 = vld [vmem:[%s5488_s0 + $0x190] sm:$0xf0] }
  0xe6   :  { %v4908_v61 = vadd.f32 %v892_v44, %v784_v58  ;;  %822 = vmatmul.bf16.gmra.mxu1 %v3286_v55  ;;  %3464 = vmatmul.msk.bf16.gmra.mxu2 %vm580_vm1, %v3302_v60  ;;  %v3318_v55 = vor.u32 %v4259_v49, %v3317_v48 }
  0xe8   :  { %1022 = vrot.lane.b32.xlu0 %v4908_v61, %s4513_s21 }
  0xe9   :  { %v897_v1 = vpop.f32.mrf.mxu2 }
  0xea   :  { %v676_v62 = vpop.f32.mrf.mxu0 }
  0xeb   :  { %v785_v63 = vpop.f32.mrf.mxu1 }
  0xec   :  { %v786_v0 = vadd.f32 %v785_v63, %v676_v62  ;;  %v3338_v62 = vor.u32 %v4263_v54, %v3337_v52  ;;  %v3491_v52 = vld [vmem:[#allocation2 + $0x68] sm:$0xf0]  ;;  %v5024_v54 = vld [vmem:[%s5490_s2] ss:$0 sm:$0xff] }
  0xee   :  { %v4913_v3 = vadd.f32 %v894_v59, %v786_v0  ;;  %v3497_v0 = vld [vmem:[#allocation2 + $0x70] sm:$0xf] }
  0xf0   :  { %1024 = vrot.lane.b32.xlu1 %v4913_v3, %s4513_s21 }
  0xf1   :  { %v899_v16 = vpop.f32.mrf.mxu2 }
  0xf2   :  { %v679_v13 = vpop.f32.mrf.mxu0 }
  0xf3   :  { %v788_v14 = vpop.f32.mrf.mxu1 }
  0xf4   :  { %v789_v15 = vadd.f32 %v788_v14, %v679_v13  ;;  %v3329_v13 = vld [vmem:[%s5488_s0 + $0x180] sm:$0xf] }
  0xf5   :  { %718 = vmatmul.bf16.gmra.mxu0 %v3294_v11  ;;  %v4305_v11 = vld [vmem:[#allocation2 + $0x64] sm:$0xf0] }
  0xf6   :  { %v4935_v18 = vadd.f32 %v897_v1, %v789_v15  ;;  %827 = vmatmul.bf16.gmra.mxu1 %v3298_v12  ;;  %3465 = vmatmul.msk.bf16.gmra.mxu2 %vm580_vm1, %v3314_v17  ;;  %v4307_v1 = vld [vmem:[#allocation2 + $0x74] sm:$0xf0]  ;;  %v3490_v14 = vor.u32 %v4305_v11, %v3489_v10  ;;  %v4262_v15 = vld [vmem:[%s5488_s0 + $0x188] sm:$0xf0]  ;;  %v3331_v17 = vld [vmem:[%s5488_s0 + $0x18c] sm:$0xf0] }
  0xf7   :  { %v3498_v4 = vor.u32 %v4307_v1, %v3497_v0  ;;  %v3330_v25 = vor.u32 %v4262_v15, %v3329_v13  ;;  %v3361_v0 = vld [vmem:[%s5488_s0 + $0x1b8] sm:$0xf] }
  0xf8   :  { %1026 = vrot.lane.b32.xlu2 %v4935_v18, %s4513_s21  ;;  %v4379_v1 = vld [vmem:[#allocation2 + $0x2b4] sm:$0xf0] }
  0xf9   :  { %v902_v23 = vpop.f32.mrf.mxu2  ;;  %1309 = vmatpush.bf16.msra.mxu3 %v3498_v4  ;;  %v4269_v4 = vld [vmem:[%s5488_s0 + $0x1c0] sm:$0xf0] }
  0xfa   :  { %v681_v19 = vpop.f32.mrf.mxu0 }
  0xfb   :  { %v790_v20 = vpop.f32.mrf.mxu1 }
  0xfc   :  { %v791_v22 = vadd.f32 %v790_v20, %v681_v19  ;;  %v3349_v19 = vld [vmem:[%s5488_s0 + $0x1a0] sm:$0xf]  ;;  %v4266_v20 = vld [vmem:[%s5488_s0 + $0x1a8] sm:$0xf0] }
  0xfd   :  { %1310 = vmatpush.bf16.msra.mxu3 %v3490_v14 }
  0xfe   :  { %v4940_v24 = vadd.f32 %v899_v16, %v791_v22  ;;  %v4261_v16 = vld [vmem:[%s5488_s0 + $0x184] sm:$0xf]  ;;  %v3481_v22 = vld [vmem:[#allocation2 + $0x50] sm:$0xf] }
  0xff   :  { %v3334_v27 = vor.u32 %v4261_v16, %v3331_v17 }
 0x100   :  { %1028 = vrot.lane.b32.xlu0 %v4940_v24, %s4513_s21 }
 0x101   :  { %v904_v37 = vpop.f32.mrf.mxu2 }
 0x102   :  { %v684_v34 = vpop.f32.mrf.mxu0 }
 0x103   :  { %v793_v35 = vpop.f32.mrf.mxu1 }
 0x104   :  { %v794_v36 = vadd.f32 %v793_v35, %v684_v34  ;;  %v3473_v34 = vld [vmem:[#allocation2 + $0x40] sm:$0xf]  ;;  %v4301_v35 = vld [vmem:[#allocation2 + $0x44] sm:$0xf0] }
 0x105   :  { %723 = vmatmul.bf16.gmra.mxu0 %v3306_v32 }
 0x106   :  { %v4962_v39 = vadd.f32 %v902_v23, %v794_v36  ;;  %832 = vmatmul.bf16.gmra.mxu1 %v3310_v33  ;;  %3466 = vmatmul.msk.bf16.gmra.mxu2 %vm580_vm1, %v3326_v38  ;;  %v4303_v23 = vld [vmem:[#allocation2 + $0x54] sm:$0xf0]  ;;  %v3350_v33 = vor.u32 %v4266_v20, %v3349_v19  ;;  %v4306_v38 = vld [vmem:[#allocation2 + $0x74] sm:$0xf] }
 0x107   :  { %v3482_v28 = vor.u32 %v4303_v23, %v3481_v22  ;;  %v3362_v22 = vor.u32 %v4269_v4, %v3361_v0  ;;  %v4299_v4 = vld [vmem:[#allocation2 + $0x34] sm:$0xf0] }
 0x108   :  { %1030 = vrot.lane.b32.xlu1 %v4962_v39, %s4513_s21 }
 0x109   :  { %v907_v44 = vpop.f32.mrf.mxu2  ;;  %1311 = vmatpush.bf16.msra.mxu3 %v3482_v28 }
 0x10a   :  { %v686_v41 = vpop.f32.mrf.mxu0 }
 0x10b   :  { %v795_v42 = vpop.f32.mrf.mxu1 }
 0x10c   :  { %v796_v43 = vadd.f32 %v795_v42, %v686_v41  ;;  %v3499_v41 = vld [vmem:[#allocation2 + $0x78] sm:$0xf0] }
 0x10e   :  { %v4967_v46 = vadd.f32 %v904_v37, %v796_v43  ;;  %v3474_v37 = vor.u32 %v4301_v35, %v3473_v34  ;;  %v3502_v43 = vor.u32 %v4306_v38, %v3499_v41  ;;  %v3353_v41 = vld [vmem:[%s5488_s0 + $0x1b0] sm:$0xf] }
 0x110   :  { %1032 = vrot.lane.b32.xlu2 %v4967_v46, %s4513_s21  ;;  %1312 = vmatpush.bf16.msra.mxu3 %v3474_v37 }
 0x111   :  { %v909_v60 = vpop.f32.mrf.mxu2 }
 0x112   :  { %v689_v57 = vpop.f32.mrf.mxu0 }
 0x113   :  { %v798_v58 = vpop.f32.mrf.mxu1 }
 0x114   :  { %v799_v59 = vadd.f32 %v798_v58, %v689_v57  ;;  %1323 = vmatpush.bf16.msrb.mxu3 %v3502_v43  ;;  %v3494_v57 = vor.u32 %v4304_v51, %v3491_v52  ;;  %v4268_v43 = vld [vmem:[%s5488_s0 + $0x1b8] sm:$0xf0] }
 0x115   :  { %728 = vmatmul.bf16.gmra.mxu0 %v3318_v55  ;;  %v3354_v51 = vor.u32 %v4268_v43, %v3353_v41 }
 0x116   :  { %v4989_v63 = vadd.f32 %v907_v44, %v799_v59  ;;  %837 = vmatmul.bf16.gmra.mxu1 %v3322_v56  ;;  %3467 = vmatmul.msk.bf16.gmra.mxu2 %vm580_vm1, %v3338_v62  ;;  %v3341_v56 = vld [vmem:[%s5488_s0 + $0x198] sm:$0xf]  ;;  %v4265_v59 = vld [vmem:[%s5488_s0 + $0x1a0] sm:$0xf0]  ;;  %v3343_v62 = vld [vmem:[%s5488_s0 + $0x1a4] sm:$0xf0] }
 0x117   :  { %v3342_v10 = vor.u32 %v4265_v59, %v3341_v56 }
 0x118   :  { %1034 = vrot.lane.b32.xlu0 %v4989_v63, %s4513_s21  ;;  %1324 = vmatpush.bf16.msrb.mxu3 %v3494_v57 }
 0x119   :  { %v912_v9 = vpop.f32.mrf.mxu2 }
 0x11a   :  { %v691_v5 = vpop.f32.mrf.mxu0 }
 0x11b   :  { %v800_v6 = vpop.f32.mrf.mxu1 }
 0x11c   :  { %v801_v8 = vadd.f32 %v800_v6, %v691_v5  ;;  %v4302_v6 = vld [vmem:[#allocation2 + $0x54] sm:$0xf] }
 0x11e   :  { %v4994_v12 = vadd.f32 %v909_v60, %v801_v8  ;;  %v4264_v60 = vld [vmem:[%s5488_s0 + $0x19c] sm:$0xf] }
 0x11f   :  { %v3483_v8 = vld [vmem:[#allocation2 + $0x58] sm:$0xf0]  ;;  %v3346_v11 = vor.u32 %v4264_v60, %v3343_v62 }
 0x120   :  { %1036 = vrot.lane.b32.xlu1 %v4994_v12, %s4513_s21  ;;  %v3486_v13 = vor.u32 %v4302_v6, %v3483_v8 }
 0x121   :  { %v914_v32 = vpop.f32.mrf.mxu2 }
 0x122   :  { %v694_v29 = vpop.f32.mrf.mxu0  ;;  %1325 = vmatpush.bf16.msrb.mxu3 %v3486_v13  ;;  %v3905_v13 = vld [vmem:[#allocation2 + $0x330] sm:$0xf] }
 0x123   :  { %v803_v30 = vpop.f32.mrf.mxu1 }
 0x124   :  { %v804_v31 = vadd.f32 %v803_v30, %v694_v29 }
 0x125   :  { %733 = vmatmul.bf16.gmra.mxu0 %v3330_v25  ;;  %v4300_v25 = vld [vmem:[#allocation2 + $0x44] sm:$0xf] }
 0x126   :  { %v5016_v36 = vadd.f32 %v912_v9, %v804_v31  ;;  %842 = vmatmul.bf16.gmra.mxu1 %v3334_v27  ;;  %3468 = vmatmul.msk.bf16.gmra.mxu2 %vm580_vm1, %v3350_v33  ;;  %v3475_v27 = vld [vmem:[#allocation2 + $0x48] sm:$0xf0] }
 0x127   :  { %v3478_v29 = vor.u32 %v4300_v25, %v3475_v27  ;;  %v4295_v25 = vld [vmem:[#allocation2 + $0x14] sm:$0xf0] }
 0x128   :  { %1038 = vrot.lane.b32.xlu2 %v5016_v36, %s4513_s21 }
 0x129   :  { %v917_v50 = vpop.f32.mrf.mxu2  ;;  %1326 = vmatpush.bf16.msrb.mxu3 %v3478_v29  ;;  %v3365_v29 = vld [vmem:[%s5488_s0 + $0x1c8] sm:$0xf] }
 0x12a   :  { %v1011_v42 = vpop.permute.xlu1 %1010  ;;  %v696_v44 = vpop.f32.mrf.mxu0 }
 0x12b   :  { %v805_v48 = vpop.f32.mrf.mxu1  ;;  %v1124_v58 = vadd.f32 %v1011_v42, %v4804_v47  ;;  %v3837_v47 = vld [vmem:[#allocation2 + $0x2b0] sm:$0xf] }
 0x12c   :  { %v806_v49 = vadd.f32 %v805_v48, %v696_v44  ;;  %v3838_v5 = vor.u32 %v4379_v1, %v3837_v47  ;;  %v4267_v44 = vld [vmem:[%s5488_s0 + $0x1b4] sm:$0xf]  ;;  %v3355_v48 = vld [vmem:[%s5488_s0 + $0x1bc] sm:$0xf0]  ;;  %v3531_v1 = vld [vmem:[#allocation2 + $0x30] sm:$0xf] }
 0x12d   :  { %v1166_v14 = vadd.f32 %v5024_v54, %v1124_v58  ;;  %v3358_v52 = vor.u32 %v4267_v44, %v3355_v48 }
 0x12e   :  { %v5026_v55 = vadd.f32 %v914_v32, %v806_v49  ;;  %2141 = vmatpush.bf16.msrb.mxu2 %v3838_v5  ;;  %v3373_v49 = vld [vmem:[%s5488_s0 + $0x1d0] sm:$0xf] }
 0x12f   :  { %v1204_v30 = vmax.f32 %v1166_v14, 0.0  ;;  %v4395_v14 = vld [vmem:[#allocation2 + $0x334] sm:$0xf0] }
 0x130   :  { %1040 = vrot.lane.b32.xlu0 %v5026_v55, %s4513_s21 }
 0x131   :  { %v919_v20 = vpop.f32.mrf.mxu2 }
 0x132   :  { %v1013_v9 = vpop.permute.xlu1 %1012  ;;  %v699_v16 = vpop.f32.mrf.mxu0 }
 0x133   :  { %v1125_v15 = vadd.f32 %v1013_v9, %v4810_v53  ;;  %v808_v17 = vpop.f32.mrf.mxu1  ;;  %v3523_v9 = vld [vmem:[#allocation2 + $0x20] sm:$0xf] }
 0x134   :  { %v809_v19 = vadd.f32 %v808_v17, %v699_v16 }
 0x135   :  { %v1167_v23 = vadd.f32 %v5024_v54, %v1125_v15  ;;  %738 = vmatmul.bf16.gmra.mxu0 %v3342_v10  ;;  %v3906_v15 = vor.u32 %v4395_v14, %v3905_v13 }
 0x136   :  { %v5052_v28 = vadd.f32 %v917_v50, %v809_v19  ;;  %847 = vmatmul.bf16.gmra.mxu1 %v3346_v11  ;;  %3469 = vmatmul.msk.bf16.gmra.mxu2 %vm580_vm1, %v3362_v22  ;;  %v4297_v11 = vld [vmem:[#allocation2 + $0x24] sm:$0xf0] }
 0x137   :  { %v1205_v31 = vmax.f32 %v1167_v23, 0.0  ;;  %v3524_v22 = vor.u32 %v4297_v11, %v3523_v9  ;;  %2311 = vmatpush.bf16.msrb.mxu1 %v3906_v15  ;;  %v3515_v23 = vld [vmem:[#allocation2 + $0x10] sm:$0xf]  ;;  %v4402_v9 = vld [vmem:[#allocation2 + $0x374] sm:$0xf] }
 0x138   :  { %1042 = vrot.lane.b32.xlu1 %v5052_v28, %s4513_s21  ;;  %v3941_v11 = vld [vmem:[#allocation2 + $0x378] sm:$0xf0] }
 0x139   :  { %v5057_v53 = vpack.c.bf16 %v1205_v31, %v1204_v30  ;;  %v922_v37 = vpop.f32.mrf.mxu2  ;;  %v4271_v30 = vld [vmem:[%s5488_s0 + $0x1d0] sm:$0xf0]  ;;  %v4270_v31 = vld [vmem:[%s5488_s0 + $0x1cc] sm:$0xf]  ;;  %v3944_v13 = vor.u32 %v4402_v9, %v3941_v11 }
 0x13a   :  { %v1015_v32 = vpop.permute.xlu0 %1014  ;;  %v701_v33 = vpop.f32.mrf.mxu0 }
 0x13b   :  { %v810_v34 = vpop.f32.mrf.mxu1  ;;  %v1126_v42 = vadd.f32 %v1015_v32, %v4827_v2  ;;  %v4272_v2 = vld [vmem:[%s5488_s0 + $0x1d8] sm:$0xf0]  ;;  %v3367_v32 = vld [vmem:[%s5488_s0 + $0x1d4] sm:$0xf0]  ;;  %2410 = vmatpush.bf16.msrb.mxu0 %v3944_v13  ;;  %v4310_v13 = vld [vmem:[#allocation2 + $0x94] sm:$0xf] }
 0x13c   :  { %v811_v35 = vadd.f32 %v810_v34, %v701_v33  ;;  %v3374_v0 = vor.u32 %v4272_v2, %v3373_v49  ;;  %v3516_v33 = vor.u32 %v4295_v25, %v3515_v23  ;;  %v3507_v34 = vld [vmem:[#allocation2] sm:$0xf]  ;;  %v3370_v41 = vor.u32 %v4270_v31, %v3367_v32  ;;  %v4298_v2 = vld [vmem:[#allocation2 + $0x34] sm:$0xf] }
 0x13d   :  { %v1168_v56 = vadd.f32 %v5024_v54, %v1126_v42  ;;  %v3557_v25 = vld [vmem:[#allocation2 + $0xa0] sm:$0xf] }
 0x13e   :  { %v5059_v38 = vadd.f32 %v919_v20, %v811_v35  ;;  %v4293_v35 = vld [vmem:[#allocation2 + $0x4] sm:$0xf0] }
 0x13f   :  { %v1206_v6 = vmax.f32 %v1168_v56, 0.0  ;;  %v3508_v49 = vor.u32 %v4293_v35, %v3507_v34  ;;  %v4296_v56 = vld [vmem:[#allocation2 + $0x24] sm:$0xf]  ;;  %v3549_v35 = vld [vmem:[#allocation2 + $0x90] sm:$0xf] }
 0x140   :  { %1044 = vrot.lane.b32.xlu2 %v5059_v38, %s4513_s21 }
 0x141   :  { %v924_v62 = vpop.f32.mrf.mxu2 }
 0x142   :  { %v1017_v50 = vpop.permute.xlu0 %1016  ;;  %v704_v58 = vpop.f32.mrf.mxu0 }
 0x143   :  { %v1127_v57 = vadd.f32 %v1017_v50, %v4832_v7  ;;  %v813_v59 = vpop.f32.mrf.mxu1  ;;  %v3532_v7 = vor.u32 %v4299_v4, %v3531_v1  ;;  %v3533_v50 = vld [vmem:[#allocation2 + $0x38] sm:$0xf0] }
 0x144   :  { %v814_v60 = vadd.f32 %v813_v59, %v704_v58  ;;  %v3517_v1 = vld [vmem:[#allocation2 + $0x18] sm:$0xf0] }
 0x145   :  { %v1169_v47 = vadd.f32 %v5024_v54, %v1127_v57  ;;  %743 = vmatmul.bf16.gmra.mxu0 %v3354_v51  ;;  %v3525_v57 = vld [vmem:[#allocation2 + $0x28] sm:$0xf0] }
 0x146   :  { %v5085_v5 = vadd.f32 %v922_v37, %v814_v60  ;;  %852 = vmatmul.bf16.gmra.mxu1 %v3358_v52  ;;  %3470 = vmatmul.msk.bf16.gmra.mxu2 %vm580_vm1, %v3374_v0  ;;  %v3366_v37 = vor.u32 %v4271_v30, %v3365_v29  ;;  %v3536_v52 = vor.u32 %v4298_v2, %v3533_v50  ;;  %v4313_v29 = vld [vmem:[#allocation2 + $0xa4] sm:$0xf0] }
 0x147   :  { %v1207_v8 = vmax.f32 %v1169_v47, 0.0  ;;  %v3528_v0 = vor.u32 %v4296_v56, %v3525_v57  ;;  %v4294_v47 = vld [vmem:[#allocation2 + $0x14] sm:$0xf]  ;;  %v3558_v34 = vor.u32 %v4313_v29, %v3557_v25  ;;  %v3543_v25 = vld [vmem:[#allocation2 + $0x88] sm:$0xf0] }
 0x148   :  { %1046 = vrot.lane.b32.xlu0 %v5085_v5, %s4513_s21  ;;  %v4314_v57 = vld [vmem:[#allocation2 + $0xb4] sm:$0xf] }
 0x149   :  { %v1251_v10 = vpack.c.bf16 %v1207_v8, %v1206_v6  ;;  %v927_v20 = vpop.f32.mrf.mxu2  ;;  %v3520_v6 = vor.u32 %v4294_v47, %v3517_v1  ;;  %v4292_v8 = vld [vmem:[#allocation2 + $0x4] sm:$0xf] }
 0x14a   :  { %v706_v16 = vpop.f32.mrf.mxu0 }
 0x14b   :  { %v815_v17 = vpop.f32.mrf.mxu1  ;;  %3503 = vmatmul.msk.bf16.vlgmr.msra.gmra.mxu3 %vm1301_vm2, %v1251_v10 }
 0x14c   :  { %v816_v19 = vadd.f32 %v815_v17, %v706_v16  ;;  %1380 = vmatpush.bf16.msra.mxu3 %v3532_v7  ;;  %v3509_v7 = vld [vmem:[#allocation2 + $0x8] sm:$0xf0] }
 0x14d   :  { %v3512_v17 = vor.u32 %v4292_v8, %v3509_v7 }
 0x14e   :  { %v5091_v27 = vadd.f32 %v924_v62, %v816_v19  ;;  %v3565_v19 = vld [vmem:[#allocation2 + $0xb0] sm:$0xf] }
 0x150   :  { %1048 = vrot.lane.b32.xlu1 %v5091_v27, %s4513_s21  ;;  %1381 = vmatpush.bf16.msra.mxu3 %v3524_v22 }
 0x151   :  { %v929_v48 = vpop.f32.mrf.mxu2 }
 0x152   :  { %v709_v42 = vpop.f32.mrf.mxu0 }
 0x153   :  { %v818_v43 = vpop.f32.mrf.mxu1 }
 0x154   :  { %v819_v44 = vadd.f32 %v818_v43, %v709_v42  ;;  %1382 = vmatpush.bf16.msra.mxu3 %v3516_v33  ;;  %v1019_v42 = vpop.permute.xlu2 %1018 }
 0x155   :  { %748 = vmatmul.bf16.gmra.mxu0 %v3366_v37  ;;  %v4311_v37 = vld [vmem:[#allocation2 + $0x94] sm:$0xf0] }
 0x156   :  { %v5107_v51 = vadd.f32 %v927_v20, %v819_v44  ;;  %857 = vmatmul.bf16.gmra.mxu1 %v3370_v41  ;;  %v4315_v20 = vld [vmem:[#allocation2 + $0xb4] sm:$0xf0]  ;;  %v3550_v43 = vor.u32 %v4311_v37, %v3549_v35  ;;  %v3541_v44 = vld [vmem:[#allocation2 + $0x80] sm:$0xf] }
 0x157   :  { %v3566_v23 = vor.u32 %v4315_v20, %v3565_v19  ;;  %v4323_v35 = vld [vmem:[#allocation2 + $0xf4] sm:$0xf0] }
 0x158   :  { %1383 = vmatpush.bf16.msra.mxu3 %v3508_v49  ;;  %1050 = vrot.lane.b32.xlu2 %v5107_v51, %s4513_s21 }
 0x159   :  { %v932_v62 = vpop.f32.mrf.mxu2 }
 0x15a   :  { %v711_v58 = vpop.f32.mrf.mxu0 }
 0x15b   :  { %v820_v59 = vpop.f32.mrf.mxu1  ;;  %3504 = vmatmul.msk.bf16.vlgmr.msrb.gmra.mxu3 %vm1301_vm2, %v1251_v10 }
 0x15c   :  { %v821_v60 = vadd.f32 %v820_v59, %v711_v58  ;;  %1394 = vmatpush.bf16.msrb.mxu3 %v3536_v52  ;;  %v3567_v58 = vld [vmem:[#allocation2 + $0xb8] sm:$0xf0]  ;;  %v1021_v47 = vpop.permute.xlu2 %1020 }
 0x15d   :  { %v1129_v11 = vadd.f32 %v1021_v47, %v4859_v26 }
 0x15e   :  { %v5112_v4 = vadd.f32 %v929_v48, %v821_v60  ;;  %v4309_v48 = vld [vmem:[#allocation2 + $0x84] sm:$0xf0]  ;;  %v3570_v60 = vor.u32 %v4314_v57, %v3567_v58 }
 0x15f   :  { %v3542_v56 = vor.u32 %v4309_v48, %v3541_v44  ;;  %v1171_v20 = vadd.f32 %v5024_v54, %v1129_v11  ;;  %v3591_v48 = vld [vmem:[#allocation2 + $0xe0] sm:$0xf] }
 0x160   :  { %1052 = vrot.lane.b32.xlu0 %v5112_v4, %s4513_s21  ;;  %1395 = vmatpush.bf16.msrb.mxu3 %v3528_v0  ;;  %v3559_v0 = vld [vmem:[#allocation2 + $0xa8] sm:$0xf0] }
 0x161   :  { %v934_v16 = vpop.f32.mrf.mxu2 }
 0x162   :  { %v714_v14 = vpop.f32.mrf.mxu0 }
 0x163   :  { %v823_v10 = vpop.f32.mrf.mxu1 }
 0x164   :  { %v824_v15 = vadd.f32 %v823_v10, %v714_v14  ;;  %1396 = vmatpush.bf16.msrb.mxu3 %v3520_v6  ;;  %v3551_v14 = vld [vmem:[#allocation2 + $0x98] sm:$0xf0] }
 0x166   :  { %v5116_v22 = vadd.f32 %v932_v62, %v824_v15  ;;  %v4312_v62 = vld [vmem:[#allocation2 + $0xa4] sm:$0xf]  ;;  %v3829_v15 = vld [vmem:[#allocation2 + $0x2a0] sm:$0xf] }
 0x167   :  { %v3562_v9 = vor.u32 %v4312_v62, %v3559_v0  ;;  %v3583_v62 = vld [vmem:[#allocation2 + $0xd0] sm:$0xf]  ;;  %v4319_v0 = vld [vmem:[#allocation2 + $0xd4] sm:$0xf0] }
 0x168   :  { %1054 = vrot.lane.b32.xlu1 %v5116_v22, %s4513_s21  ;;  %1397 = vmatpush.bf16.msrb.mxu3 %v3512_v17  ;;  %v1128_v17 = vadd.f32 %v1019_v42, %v4854_v21  ;;  %v1209_v21 = vmax.f32 %v1171_v20, 0.0 }
 0x169   :  { %v937_v33 = vpop.f32.mrf.mxu2 }
 0x16a   :  { %v716_v30 = vpop.f32.mrf.mxu0  ;;  %v1170_v26 = vadd.f32 %v5024_v54, %v1128_v17 }
 0x16b   :  { %v825_v31 = vpop.f32.mrf.mxu1  ;;  %3537 = vmatmul.msk.bf16.vlgmr.msra.gmra.mxu3 %vm1301_vm2, %v5057_v53 }
 0x16c   :  { %v826_v32 = vadd.f32 %v825_v31, %v716_v30  ;;  %1461 = vmatpush.bf16.msra.mxu3 %v3566_v23  ;;  %v4308_v23 = vld [vmem:[#allocation2 + $0x84] sm:$0xf]  ;;  %v1208_v42 = vmax.f32 %v1170_v26, 0.0 }
 0x16e   :  { %v5122_v41 = vadd.f32 %v934_v16, %v826_v32  ;;  %v4377_v16 = vld [vmem:[#allocation2 + $0x2a4] sm:$0xf0]  ;;  %v1404_v44 = vpack.c.bf16 %v1209_v21, %v1208_v42 }
 0x16f   :  { %v3830_v19 = vor.u32 %v4377_v16, %v3829_v15 }
 0x170   :  { %1056 = vrot.lane.b32.xlu2 %v5122_v41, %s4513_s21  ;;  %1462 = vmatpush.bf16.msra.mxu3 %v3558_v34  ;;  %v3599_v34 = vld [vmem:[#allocation2 + $0xf0] sm:$0xf] }
 0x171   :  { %v939_v52 = vpop.f32.mrf.mxu2  ;;  %2142 = vmatpush.bf16.msrb.mxu2 %v3830_v19  ;;  %v4322_v19 = vld [vmem:[#allocation2 + $0xf4] sm:$0xf] }
 0x172   :  { %v719_v49 = vpop.f32.mrf.mxu0 }
 0x173   :  { %v828_v2 = vpop.f32.mrf.mxu1 }
 0x174   :  { %v829_v50 = vadd.f32 %v828_v2, %v719_v49  ;;  %1463 = vmatpush.bf16.msra.mxu3 %v3550_v43  ;;  %v3600_v43 = vor.u32 %v4323_v35, %v3599_v34  ;;  %v4321_v49 = vld [vmem:[#allocation2 + $0xe4] sm:$0xf0]  ;;  %v1023_v2 = vpop.permute.xlu0 %1022 }
 0x176   :  { %v5126_v59 = vadd.f32 %v937_v33, %v829_v50  ;;  %v3546_v33 = vor.u32 %v4308_v23, %v3543_v25  ;;  %v3897_v23 = vld [vmem:[#allocation2 + $0x320] sm:$0xf]  ;;  %v4393_v25 = vld [vmem:[#allocation2 + $0x324] sm:$0xf0] }
 0x177   :  { %v3898_v26 = vor.u32 %v4393_v25, %v3897_v23  ;;  %v4331_v23 = vld [vmem:[#allocation2 + $0x134] sm:$0xf0] }
 0x178   :  { %1058 = vrot.lane.b32.xlu0 %v5126_v59, %s4513_s21  ;;  %1464 = vmatpush.bf16.msra.mxu3 %v3542_v56  ;;  %v5145_v56 = vpop.permute.xlu2 %1026 }
 0x179   :  { %v942_v7 = vpop.f32.mrf.mxu2  ;;  %2312 = vmatpush.bf16.msrb.mxu1 %v3898_v26 }
 0x17a   :  { %v721_v1 = vpop.f32.mrf.mxu0 }
 0x17b   :  { %v830_v6 = vpop.f32.mrf.mxu1  ;;  %3538 = vmatmul.msk.bf16.vlgmr.msrb.gmra.mxu3 %vm1301_vm2, %v5057_v53  ;;  %v3554_v53 = vor.u32 %v4310_v13, %v3551_v14 }
 0x17c   :  { %v831_v8 = vadd.f32 %v830_v6, %v721_v1  ;;  %1475 = vmatpush.bf16.msrb.mxu3 %v3570_v60  ;;  %v3592_v60 = vor.u32 %v4321_v49, %v3591_v48  ;;  %v3584_v1 = vor.u32 %v4319_v0, %v3583_v62  ;;  %v3575_v6 = vld [vmem:[#allocation2 + $0xc0] sm:$0xf]  ;;  %v4316_v0 = vld [vmem:[#allocation2 + $0xc4] sm:$0xf] }
 0x17e   :  { %v5133_v10 = vadd.f32 %v939_v52, %v831_v8  ;;  %v4317_v8 = vld [vmem:[#allocation2 + $0xc4] sm:$0xf0] }
 0x17f   :  { %v3576_v17 = vor.u32 %v4317_v8, %v3575_v6 }
 0x180   :  { %1060 = vrot.lane.b32.xlu1 %v5133_v10, %s4513_s21  ;;  %1476 = vmatpush.bf16.msrb.mxu3 %v3562_v9  ;;  %v5151_v9 = vpop.permute.xlu0 %1028  ;;  %v5153_v14 = vpop.permute.xlu2 %1032 }
 0x181   :  { %v944_v32 = vpop.f32.mrf.mxu2 }
 0x182   :  { %v724_v29 = vpop.f32.mrf.mxu0 }
 0x183   :  { %v833_v30 = vpop.f32.mrf.mxu1 }
 0x184   :  { %v834_v31 = vadd.f32 %v833_v30, %v724_v29  ;;  %1477 = vmatpush.bf16.msrb.mxu3 %v3554_v53  ;;  %v3601_v53 = vld [vmem:[#allocation2 + $0xf8] sm:$0xf0]  ;;  %v4320_v30 = vld [vmem:[#allocation2 + $0xe4] sm:$0xf] }
 0x185   :  { %v3604_v29 = vor.u32 %v4322_v19, %v3601_v53  ;;  %v3633_v53 = vld [vmem:[#allocation2 + $0x130] sm:$0xf] }
 0x186   :  { %v5140_v37 = vadd.f32 %v942_v7, %v834_v31  ;;  %v1025_v7 = vpop.permute.xlu1 %1024  ;;  %v3593_v31 = vld [vmem:[#allocation2 + $0xe8] sm:$0xf0] }
 0x187   :  { %v3596_v48 = vor.u32 %v4320_v30, %v3593_v31  ;;  %v1131_v49 = vadd.f32 %v1025_v7, %v4886_v45 }
 0x188   :  { %1478 = vmatpush.bf16.msrb.mxu3 %v3546_v33  ;;  %1062 = vrot.lane.b32.xlu2 %v5140_v37, %s4513_s21  ;;  %v1039_v35 = vpop.permute.xlu2 %1038 }
 0x189   :  { %v947_v58 = vpop.f32.mrf.mxu2  ;;  %v1173_v62 = vadd.f32 %v5024_v54, %v1131_v49 }
 0x18a   :  { %v726_v50 = vpop.f32.mrf.mxu0  ;;  %v5161_v33 = vpop.permute.xlu0 %1034 }
 0x18b   :  { %v835_v52 = vpop.f32.mrf.mxu1  ;;  %3571 = vmatmul.msk.bf16.vlgmr.msra.gmra.mxu3 %vm1301_vm2, %v1404_v44 }
 0x18c   :  { %v836_v57 = vadd.f32 %v835_v52, %v726_v50  ;;  %1546 = vmatpush.bf16.msra.mxu3 %v3600_v43  ;;  %v4318_v50 = vld [vmem:[#allocation2 + $0xd4] sm:$0xf]  ;;  %v3585_v52 = vld [vmem:[#allocation2 + $0xd8] sm:$0xf0] }
 0x18e   :  { %v5147_v47 = vadd.f32 %v944_v32, %v836_v57  ;;  %v5159_v32 = vpop.permute.xlu1 %1030 }
 0x190   :  { %1064 = vrot.lane.b32.xlu0 %v5147_v47, %s4513_s21  ;;  %1547 = vmatpush.bf16.msra.mxu3 %v3592_v60  ;;  %v1138_v60 = vadd.f32 %v1039_v35, %v4989_v63  ;;  %v3625_v35 = vld [vmem:[#allocation2 + $0x120] sm:$0xf] }
 0x191   :  { %v949_v16 = vpop.f32.mrf.mxu2 }
 0x192   :  { %v729_v11 = vpop.f32.mrf.mxu0  ;;  %v1180_v7 = vadd.f32 %v5024_v54, %v1138_v60 }
 0x193   :  { %v838_v13 = vpop.f32.mrf.mxu1 }
 0x194   :  { %v839_v15 = vadd.f32 %v838_v13, %v729_v11  ;;  %1548 = vmatpush.bf16.msra.mxu3 %v3584_v1  ;;  %v3577_v1 = vld [vmem:[#allocation2 + $0xc8] sm:$0xf0] }
 0x196   :  { %v5155_v20 = vadd.f32 %v947_v58, %v839_v15  ;;  %v1130_v58 = vadd.f32 %v1023_v2, %v4881_v40  ;;  %v5172_v6 = vpop.permute.xlu1 %1036 }
 0x198   :  { %1066 = vrot.lane.b32.xlu1 %v5155_v20, %s4513_s21  ;;  %1549 = vmatpush.bf16.msra.mxu3 %v3576_v17  ;;  %v1172_v8 = vadd.f32 %v5024_v54, %v1130_v58  ;;  %v1211_v17 = vmax.f32 %v1173_v62, 0.0  ;;  %v3617_v62 = vld [vmem:[#allocation2 + $0x110] sm:$0xf] }
 0x199   :  { %v952_v43 = vpop.f32.mrf.mxu2 }
 0x19a   :  { %v731_v21 = vpop.f32.mrf.mxu0  ;;  %v1045_v13 = vpop.permute.xlu2 %1044  ;;  %v1210_v26 = vmax.f32 %v1172_v8, 0.0  ;;  %v3933_v8 = vld [vmem:[#allocation2 + $0x368] sm:$0xf0] }
 0x19b   :  { %v840_v34 = vpop.f32.mrf.mxu1  ;;  %3572 = vmatmul.msk.bf16.vlgmr.msrb.gmra.mxu3 %vm1301_vm2, %v1404_v44  ;;  %v3588_v44 = vor.u32 %v4318_v50, %v3585_v52  ;;  %v1141_v31 = vadd.f32 %v1045_v13, %v5026_v55  ;;  %v4325_v13 = vld [vmem:[#allocation2 + $0x104] sm:$0xf0] }
 0x19c   :  { %v841_v42 = vadd.f32 %v840_v34, %v731_v21  ;;  %1560 = vmatpush.bf16.msrb.mxu3 %v3604_v29  ;;  %v1218_v29 = vmax.f32 %v1180_v7, 0.0  ;;  %v1489_v21 = vpack.c.bf16 %v1211_v17, %v1210_v26  ;;  %v4375_v17 = vld [vmem:[#allocation2 + $0x294] sm:$0xf0] }
 0x19d   :  { %v1183_v49 = vadd.f32 %v5024_v54, %v1141_v31  ;;  %v3635_v31 = vld [vmem:[#allocation2 + $0x138] sm:$0xf0] }
 0x19e   :  { %v5165_v57 = vadd.f32 %v949_v16, %v841_v42  ;;  %v3580_v16 = vor.u32 %v4316_v0, %v3577_v1  ;;  %v4329_v42 = vld [vmem:[#allocation2 + $0x124] sm:$0xf0]  ;;  %v4327_v0 = vld [vmem:[#allocation2 + $0x114] sm:$0xf0] }
 0x19f   :  { %v3626_v60 = vor.u32 %v4329_v42, %v3625_v35  ;;  %v1221_v7 = vmax.f32 %v1183_v49, 0.0  ;;  %v4373_v42 = vld [vmem:[#allocation2 + $0x284] sm:$0xf0] }
 0x1a0   :  { %1068 = vrot.lane.b32.xlu2 %v5165_v57, %s4513_s21  ;;  %1561 = vmatpush.bf16.msrb.mxu3 %v3596_v48 }
 0x1a1   :  { %v954_v15 = vpop.f32.mrf.mxu2 }
 0x1a2   :  { %v1041_v45 = vpop.permute.xlu0 %1040  ;;  %v734_v2 = vpop.f32.mrf.mxu0 }
 0x1a3   :  { %v1139_v40 = vadd.f32 %v1041_v45, %v4994_v12  ;;  %v843_v63 = vpop.f32.mrf.mxu1  ;;  %v3634_v12 = vor.u32 %v4331_v23, %v3633_v53  ;;  %v4400_v45 = vld [vmem:[#allocation2 + $0x364] sm:$0xf] }
 0x1a4   :  { %v844_v11 = vadd.f32 %v843_v63, %v734_v2  ;;  %1562 = vmatpush.bf16.msrb.mxu3 %v3588_v44  ;;  %v3936_v2 = vor.u32 %v4400_v45, %v3933_v8 }
 0x1a5   :  { %v1181_v19 = vadd.f32 %v5024_v54, %v1139_v40 }
 0x1a6   :  { %v5178_v25 = vadd.f32 %v952_v43, %v844_v11  ;;  %v3609_v11 = vld [vmem:[#allocation2 + $0x100] sm:$0xf]  ;;  %2411 = vmatpush.bf16.msrb.mxu0 %v3936_v2  ;;  %v3619_v2 = vld [vmem:[#allocation2 + $0x118] sm:$0xf0] }
 0x1a7   :  { %v1219_v30 = vmax.f32 %v1181_v19, 0.0 }
 0x1a8   :  { %1070 = vrot.lane.b32.xlu0 %v5178_v25, %s4513_s21  ;;  %1563 = vmatpush.bf16.msrb.mxu3 %v3580_v16  ;;  %v3821_v16 = vld [vmem:[#allocation2 + $0x290] sm:$0xf] }
 0x1a9   :  { %v5183_v34 = vpack.c.bf16 %v1219_v30, %v1218_v29  ;;  %v957_v58 = vpop.f32.mrf.mxu2  ;;  %v3822_v53 = vor.u32 %v4375_v17, %v3821_v16  ;;  %v3610_v29 = vor.u32 %v4325_v13, %v3609_v11  ;;  %v4330_v30 = vld [vmem:[#allocation2 + $0x134] sm:$0xf]  ;;  %v4385_v13 = vld [vmem:[#allocation2 + $0x2e4] sm:$0xf0]  ;;  %v1132_v16 = vadd.f32 %v5145_v56, %v4908_v61 }
 0x1aa   :  { %v1043_v48 = vpop.permute.xlu1 %1042  ;;  %v736_v50 = vpop.f32.mrf.mxu0  ;;  %v3638_v49 = vor.u32 %v4330_v30, %v3635_v31 }
 0x1ab   :  { %v1140_v43 = vadd.f32 %v1043_v48, %v5016_v36  ;;  %v845_v52 = vpop.f32.mrf.mxu1  ;;  %3605 = vmatmul.msk.bf16.vlgmr.msra.gmra.mxu3 %vm1301_vm2, %v1489_v21  ;;  %v3618_v36 = vor.u32 %v4327_v0, %v3617_v62  ;;  %2143 = vmatpush.bf16.msrb.mxu2 %v3822_v53  ;;  %v3855_v53 = vld [vmem:[#allocation2 + $0x2d0] sm:$0xf] }
 0x1ac   :  { %v846_v55 = vadd.f32 %v845_v52, %v736_v50  ;;  %1631 = vmatpush.bf16.msra.mxu3 %v3634_v12  ;;  %v3813_v12 = vld [vmem:[#allocation2 + $0x280] sm:$0xf]  ;;  %v3627_v50 = vld [vmem:[#allocation2 + $0x128] sm:$0xf0]  ;;  %v3871_v52 = vld [vmem:[#allocation2 + $0x2f0] sm:$0xf] }
 0x1ad   :  { %v1182_v44 = vadd.f32 %v5024_v54, %v1140_v43  ;;  %v3814_v48 = vor.u32 %v4373_v42, %v3813_v12  ;;  %v4328_v43 = vld [vmem:[#allocation2 + $0x124] sm:$0xf] }
 0x1ae   :  { %v5189_v1 = vadd.f32 %v954_v15, %v846_v55  ;;  %v4387_v55 = vld [vmem:[#allocation2 + $0x2f4] sm:$0xf0] }
 0x1af   :  { %v1220_v40 = vmax.f32 %v1182_v44, 0.0  ;;  %2144 = vmatpush.bf16.msrb.mxu2 %v3814_v48  ;;  %v3872_v62 = vor.u32 %v4387_v55, %v3871_v52  ;;  %v3847_v52 = vld [vmem:[#allocation2 + $0x2c0] sm:$0xf] }
 0x1b0   :  { %1072 = vrot.lane.b32.xlu1 %v5189_v1, %s4513_s21  ;;  %1632 = vmatpush.bf16.msra.mxu3 %v3626_v60 }
 0x1b1   :  { %v5193_v63 = vpack.c.bf16 %v1221_v7, %v1220_v40  ;;  %v959_v26 = vpop.f32.mrf.mxu2  ;;  %v3630_v7 = vor.u32 %v4328_v43, %v3627_v50  ;;  %v4326_v40 = vld [vmem:[#allocation2 + $0x114] sm:$0xf]  ;;  %v3667_v43 = vld [vmem:[#allocation2 + $0x170] sm:$0xf]  ;;  %v4339_v50 = vld [vmem:[#allocation2 + $0x174] sm:$0xf0] }
 0x1b2   :  { %v739_v19 = vpop.f32.mrf.mxu0 }
 0x1b3   :  { %v848_v15 = vpop.f32.mrf.mxu1  ;;  %2226 = vmatpush.bf16.msra.mxu2 %v3872_v62 }
 0x1b4   :  { %v849_v23 = vadd.f32 %v848_v15, %v739_v19  ;;  %1633 = vmatpush.bf16.msra.mxu3 %v3618_v36  ;;  %v3863_v36 = vld [vmem:[#allocation2 + $0x2e0] sm:$0xf]  ;;  %v4324_v19 = vld [vmem:[#allocation2 + $0x104] sm:$0xf]  ;;  %v3611_v15 = vld [vmem:[#allocation2 + $0x108] sm:$0xf0] }
 0x1b5   :  { %v3864_v17 = vor.u32 %v4385_v13, %v3863_v36  ;;  %v3614_v48 = vor.u32 %v4324_v19, %v3611_v15  ;;  %v4337_v36 = vld [vmem:[#allocation2 + $0x164] sm:$0xf0] }
 0x1b6   :  { %v5195_v35 = vadd.f32 %v957_v58, %v849_v23  ;;  %v1133_v58 = vadd.f32 %v5151_v9, %v4913_v3  ;;  %v3622_v9 = vor.u32 %v4326_v40, %v3619_v2  ;;  %v3659_v2 = vld [vmem:[#allocation2 + $0x160] sm:$0xf] }
 0x1b7   :  { %2227 = vmatpush.bf16.msra.mxu2 %v3864_v17  ;;  %v3660_v17 = vor.u32 %v4337_v36, %v3659_v2 }
 0x1b8   :  { %1634 = vmatpush.bf16.msra.mxu3 %v3610_v29  ;;  %1074 = vrot.lane.b32.xlu2 %v5195_v35, %s4513_s21  ;;  %v1175_v3 = vadd.f32 %v5024_v54, %v1133_v58  ;;  %v1174_v29 = vadd.f32 %v5024_v54, %v1132_v16  ;;  %v1051_v16 = vpop.permute.xlu2 %1050 }
 0x1b9   :  { %v962_v8 = vpop.f32.mrf.mxu2 }
 0x1ba   :  { %v741_v60 = vpop.f32.mrf.mxu0  ;;  %v1047_v0 = vpop.permute.xlu0 %1046  ;;  %v1213_v12 = vmax.f32 %v1175_v3, 0.0  ;;  %v1212_v62 = vmax.f32 %v1174_v29, 0.0  ;;  %v3651_v3 = vld [vmem:[#allocation2 + $0x150] sm:$0xf]  ;;  %v3643_v29 = vld [vmem:[#allocation2 + $0x140] sm:$0xf] }
 0x1bb   :  { %v850_v44 = vpop.f32.mrf.mxu1  ;;  %3606 = vmatmul.msk.bf16.vlgmr.msrb.gmra.mxu3 %vm1301_vm2, %v1489_v21  ;;  %v1142_v21 = vadd.f32 %v1047_v0, %v5052_v28 }
 0x1bc   :  { %v851_v45 = vadd.f32 %v850_v44, %v741_v60  ;;  %1645 = vmatpush.bf16.msrb.mxu3 %v3638_v49  ;;  %v4381_v44 = vld [vmem:[#allocation2 + $0x2c4] sm:$0xf0] }
 0x1bd   :  { %v1184_v61 = vadd.f32 %v5024_v54, %v1142_v21  ;;  %v3848_v0 = vor.u32 %v4381_v44, %v3847_v52  ;;  %v4338_v52 = vld [vmem:[#allocation2 + $0x174] sm:$0xf]  ;;  %v3881_v44 = vld [vmem:[#allocation2 + $0x300] sm:$0xf] }
 0x1be   :  { %v5202_v11 = vadd.f32 %v959_v26, %v851_v45  ;;  %v4383_v26 = vld [vmem:[#allocation2 + $0x2d4] sm:$0xf0]  ;;  %v3668_v45 = vor.u32 %v4339_v50, %v3667_v43 }
 0x1bf   :  { %v3856_v31 = vor.u32 %v4383_v26, %v3855_v53  ;;  %v1222_v58 = vmax.f32 %v1184_v61, 0.0  ;;  %v1144_v53 = vadd.f32 %v1051_v16, %v5085_v5  ;;  %v4333_v61 = vld [vmem:[#allocation2 + $0x144] sm:$0xf0]  ;;  %v3939_v16 = vld [vmem:[#allocation2 + $0x370] sm:$0xf] }
 0x1c0   :  { %1076 = vrot.lane.b32.xlu0 %v5202_v11, %s4513_s21  ;;  %1646 = vmatpush.bf16.msrb.mxu3 %v3630_v7  ;;  %v1574_v7 = vpack.c.bf16 %v1213_v12, %v1212_v62  ;;  %v3644_v5 = vor.u32 %v4333_v61, %v3643_v29 }
 0x1c1   :  { %2228 = vmatpush.bf16.msra.mxu2 %v3856_v31  ;;  %v964_v60 = vpop.f32.mrf.mxu2  ;;  %v1186_v31 = vadd.f32 %v5024_v54, %v1144_v53 }
 0x1c2   :  { %v1049_v23 = vpop.permute.xlu1 %1048  ;;  %v744_v56 = vpop.f32.mrf.mxu0 }
 0x1c3   :  { %v1143_v28 = vadd.f32 %v1049_v23, %v5059_v38  ;;  %v853_v30 = vpop.f32.mrf.mxu1 }
 0x1c4   :  { %v854_v42 = vadd.f32 %v853_v30, %v744_v56  ;;  %1647 = vmatpush.bf16.msrb.mxu3 %v3622_v9  ;;  %v4335_v9 = vld [vmem:[#allocation2 + $0x154] sm:$0xf0] }
 0x1c5   :  { %v1185_v49 = vadd.f32 %v5024_v54, %v1143_v28  ;;  %2229 = vmatpush.bf16.msra.mxu2 %v3848_v0  ;;  %v3652_v26 = vor.u32 %v4335_v9, %v3651_v3  ;;  %v3889_v28 = vld [vmem:[#allocation2 + $0x310] sm:$0xf]  ;;  %v4391_v30 = vld [vmem:[#allocation2 + $0x314] sm:$0xf0]  ;;  %v1224_v0 = vmax.f32 %v1186_v31, 0.0 }
 0x1c6   :  { %v5214_v55 = vadd.f32 %v962_v8, %v854_v42  ;;  %v4403_v3 = vld [vmem:[#allocation2 + $0x374] sm:$0xf0]  ;;  %v3653_v31 = vld [vmem:[#allocation2 + $0x158] sm:$0xf0] }
 0x1c7   :  { %v1223_v38 = vmax.f32 %v1185_v49, 0.0  ;;  %v3890_v49 = vor.u32 %v4391_v30, %v3889_v28  ;;  %v1134_v28 = vadd.f32 %v5159_v32, %v4935_v18  ;;  %v4334_v30 = vld [vmem:[#allocation2 + $0x154] sm:$0xf] }
 0x1c8   :  { %1078 = vrot.lane.b32.xlu1 %v5214_v55, %s4513_s21  ;;  %1648 = vmatpush.bf16.msrb.mxu3 %v3614_v48  ;;  %v3656_v18 = vor.u32 %v4334_v30, %v3653_v31  ;;  %v4409_v30 = vld [vmem:[#allocation2 + $0x3a4] sm:$0xf0] }
 0x1c9   :  { %v5218_v40 = vpack.c.bf16 %v1223_v38, %v1222_v58  ;;  %v967_v23 = vpop.f32.mrf.mxu2  ;;  %2313 = vmatpush.bf16.msrb.mxu1 %v3890_v49  ;;  %v4389_v38 = vld [vmem:[#allocation2 + $0x304] sm:$0xf0]  ;;  %v1135_v49 = vadd.f32 %v5153_v14, %v4940_v24 }
 0x1ca   :  { %v746_v13 = vpop.f32.mrf.mxu0  ;;  %v3882_v2 = vor.u32 %v4389_v38, %v3881_v44  ;;  %v4399_v44 = vld [vmem:[#allocation2 + $0x354] sm:$0xf0]  ;;  %v3925_v38 = vld [vmem:[#allocation2 + $0x358] sm:$0xf0] }
 0x1cb   :  { %v855_v8 = vpop.f32.mrf.mxu1  ;;  %3639 = vmatmul.msk.bf16.vlgmr.msra.gmra.mxu3 %vm1301_vm2, %v1574_v7  ;;  %v1177_v24 = vadd.f32 %v5024_v54, %v1135_v49  ;;  %v3693_v49 = vld [vmem:[#allocation2 + $0x1a0] sm:$0xf] }
 0x1cc   :  { %v856_v21 = vadd.f32 %v855_v8, %v746_v13  ;;  %1716 = vmatpush.bf16.msra.mxu3 %v3668_v45  ;;  %v4336_v13 = vld [vmem:[#allocation2 + $0x164] sm:$0xf]  ;;  %v3661_v8 = vld [vmem:[#allocation2 + $0x168] sm:$0xf0] }
 0x1cd   :  { %2314 = vmatpush.bf16.msrb.mxu1 %v3882_v2  ;;  %v3664_v61 = vor.u32 %v4336_v13, %v3661_v8  ;;  %v4411_v2 = vld [vmem:[#allocation2 + $0x3b4] sm:$0xf0]  ;;  %v3701_v13 = vld [vmem:[#allocation2 + $0x1b0] sm:$0xf] }
 0x1ce   :  { %v5221_v19 = vadd.f32 %v964_v60, %v856_v21  ;;  %v5223_v15 = vpop.f32.mrf.mxu3  ;;  %v3669_v60 = vld [vmem:[#allocation2 + $0x178] sm:$0xf0] }
 0x1d0   :  { %1080 = vrot.lane.b32.xlu2 %v5221_v19, %s4513_s21  ;;  %1717 = vmatpush.bf16.msra.mxu3 %v3660_v17 }
 0x1d1   :  { %v969_v17 = vpop.f32.mrf.mxu2 }
 0x1d2   :  { %v1053_v56 = vpop.permute.xlu0 %1052  ;;  %v749_v42 = vpop.f32.mrf.mxu0 }
 0x1d3   :  { %v1145_v12 = vadd.f32 %v1053_v56, %v5091_v27  ;;  %v858_v48 = vpop.f32.mrf.mxu1  ;;  %v3672_v27 = vor.u32 %v4338_v52, %v3669_v60  ;;  %v3645_v52 = vld [vmem:[#allocation2 + $0x148] sm:$0xf0]  ;;  %v3923_v60 = vld [vmem:[#allocation2 + $0x350] sm:$0xf] }
 0x1d4   :  { %v859_v43 = vadd.f32 %v858_v48, %v749_v42  ;;  %1718 = vmatpush.bf16.msra.mxu3 %v3652_v26  ;;  %v1057_v26 = vpop.permute.xlu2 %1056  ;;  %v3924_v14 = vor.u32 %v4399_v44, %v3923_v60  ;;  %v4343_v60 = vld [vmem:[#allocation2 + $0x194] sm:$0xf0] }
 0x1d5   :  { %v1187_v50 = vadd.f32 %v5024_v54, %v1145_v12  ;;  %v3931_v12 = vld [vmem:[#allocation2 + $0x360] sm:$0xf] }
 0x1d6   :  { %v968_v62 = vadd.f32 %v967_v23, %v859_v43  ;;  %v5231_v58 = vpop.f32.mrf.mxu3  ;;  %v3940_v23 = vor.u32 %v4403_v3, %v3939_v16  ;;  %v1147_v43 = vadd.f32 %v1057_v26, %v5112_v4  ;;  %v3915_v3 = vld [vmem:[#allocation2 + $0x340] sm:$0xf]  ;;  %v1215_v26 = vmax.f32 %v1177_v24, 0.0 }
 0x1d7   :  { %v1225_v45 = vmax.f32 %v1187_v50, 0.0  ;;  %v4332_v50 = vld [vmem:[#allocation2 + $0x144] sm:$0xf] }
 0x1d8   :  { %1082 = vrot.lane.b32.xlu0 %v968_v62, %s4513_s21  ;;  %1719 = vmatpush.bf16.msra.mxu3 %v3644_v5  ;;  %v4398_v62 = vld [vmem:[#allocation2 + $0x354] sm:$0xf]  ;;  %v1189_v4 = vadd.f32 %v5024_v54, %v1147_v43  ;;  %v4345_v43 = vld [vmem:[#allocation2 + $0x1a4] sm:$0xf0] }
 0x1d9   :  { %v5234_v36 = vpack.c.bf16 %v1225_v45, %v1224_v0  ;;  %v3928_v0 = vor.u32 %v4398_v62, %v3925_v38  ;;  %v3973_v45 = vld [vmem:[#allocation2 + $0x3b0] sm:$0xf]  ;;  %v3949_v62 = vld [vmem:[#allocation2 + $0x380] sm:$0xf] }
 0x1da   :  { %v1055_v21 = vpop.permute.xlu1 %1054  ;;  %v751_v9 = vpop.f32.mrf.mxu0  ;;  %v3974_v8 = vor.u32 %v4411_v2, %v3973_v45  ;;  %v3677_v45 = vld [vmem:[#allocation2 + $0x180] sm:$0xf]  ;;  %v4341_v2 = vld [vmem:[#allocation2 + $0x184] sm:$0xf0] }
 0x1db   :  { %v860_v53 = vpop.f32.mrf.mxu1  ;;  %3640 = vmatmul.msk.bf16.vlgmr.msrb.gmra.mxu3 %vm1301_vm2, %v1574_v7  ;;  %3843 = vmatmul.msk.bf16.vlgmr.msrb.gmra.mxu2 %vm1301_vm2, %v5234_v36  ;;  %v1146_v56 = vadd.f32 %v1055_v21, %v5107_v51  ;;  %v4401_v7 = vld [vmem:[#allocation2 + $0x364] sm:$0xf0]  ;;  %v1176_v51 = vadd.f32 %v5024_v54, %v1134_v28 }
 0x1dc   :  { %v861_v29 = vadd.f32 %v860_v53, %v751_v9  ;;  %1730 = vmatpush.bf16.msrb.mxu3 %v3672_v27  ;;  %2396 = vmatpush.bf16.msrb.mxu2 %v3940_v23  ;;  %v3932_v5 = vor.u32 %v4401_v7, %v3931_v12  ;;  %v3648_v27 = vor.u32 %v4332_v50, %v3645_v52  ;;  %v4397_v53 = vld [vmem:[#allocation2 + $0x344] sm:$0xf0]  ;;  %v4396_v23 = vld [vmem:[#allocation2 + $0x344] sm:$0xf]  ;;  %v3685_v52 = vld [vmem:[#allocation2 + $0x190] sm:$0xf] }
 0x1dd   :  { %v1188_v32 = vadd.f32 %v5024_v54, %v1146_v56  ;;  %v1214_v16 = vmax.f32 %v1176_v51, 0.0  ;;  %2412 = vmatpush.bf16.msrb.mxu0 %v3928_v0  ;;  %2481 = vmatpush.bf16.msra.mxu1 %v3974_v8  ;;  %v3917_v54 = vld [vmem:[#allocation2 + $0x348] sm:$0xf0]  ;;  %v3965_v56 = vld [vmem:[#allocation2 + $0x3a0] sm:$0xf]  ;;  %v3694_v50 = vor.u32 %v4345_v43, %v3693_v49 }
 0x1de   :  { %v970_v42 = vadd.f32 %v969_v17, %v861_v29  ;;  %v5242_v48 = vpop.f32.mrf.mxu3  ;;  %v4347_v17 = vld [vmem:[#allocation2 + $0x1b4] sm:$0xf0]  ;;  %v1227_v29 = vmax.f32 %v1189_v4, 0.0  ;;  %v3920_v28 = vor.u32 %v4396_v23, %v3917_v54  ;;  %v3966_v12 = vor.u32 %v4409_v30, %v3965_v56  ;;  %v4405_v4 = vld [vmem:[#allocation2 + $0x384] sm:$0xf0] }
 0x1df   :  { %v1226_v21 = vmax.f32 %v1188_v32, 0.0  ;;  %v3702_v31 = vor.u32 %v4347_v17, %v3701_v13  ;;  %v3950_v0 = vor.u32 %v4405_v4, %v3949_v62  ;;  %v5266_v13 = vld [vmem:[%s5490_s2] ss:$0 sm:$0xff]  ;;  %v3703_v17 = vld [vmem:[#allocation2 + $0x1b8] sm:$0xf0] }
 0x1e0   :  { %1084 = vrot.lane.b32.xlu1 %v970_v42, %s4513_s21  ;;  %1731 = vmatpush.bf16.msrb.mxu3 %v3664_v61  ;;  %v3916_v61 = vor.u32 %v4397_v53, %v3915_v3  ;;  %v1659_v42 = vpack.c.bf16 %v1215_v26, %v1214_v16  ;;  %v4007_v56 = vld [vmem:[#allocation2 + $0x3f0] sm:$0xf]  ;;  %v4418_v30 = vld [vmem:[#allocation2 + $0x3f4] sm:$0xf]  ;;  %v4416_v62 = vld [vmem:[#allocation2 + $0x3e4] sm:$0xf] }
 0x1e1   :  { %2397 = vmatpush.bf16.msrb.mxu2 %v3932_v5  ;;  %v5254_v7 = vpack.c.bf16 %v1227_v29, %v1226_v21  ;;  %2413 = vmatpush.bf16.msrb.mxu0 %v3920_v28  ;;  %v3957_v5 = vld [vmem:[#allocation2 + $0x390] sm:$0xf]  ;;  %v4346_v21 = vld [vmem:[#allocation2 + $0x1b4] sm:$0xf]  ;;  %v3695_v28 = vld [vmem:[#allocation2 + $0x1a8] sm:$0xf0] }
 0x1e2   :  { %2482 = vmatpush.bf16.msra.mxu1 %v3966_v12  ;;  %v3706_v26 = vor.u32 %v4346_v21, %v3703_v17  ;;  %v1063_v12 = vpop.permute.xlu2 %1062 }
 0x1e4   :  { %1732 = vmatpush.bf16.msrb.mxu3 %v3656_v18  ;;  %v4407_v18 = vld [vmem:[#allocation2 + $0x394] sm:$0xf0] }
 0x1e5   :  { %2398 = vmatpush.bf16.msrb.mxu2 %v3924_v14  ;;  %v3958_v51 = vor.u32 %v4407_v18, %v3957_v5  ;;  %v3686_v14 = vor.u32 %v4343_v60, %v3685_v52  ;;  %v1137_v5 = vadd.f32 %v5172_v6, %v4967_v46  ;;  %v4342_v18 = vld [vmem:[#allocation2 + $0x194] sm:$0xf]  ;;  %v1150_v52 = vadd.f32 %v1063_v12, %v5126_v59  ;;  %v4001_v46 = vld [vmem:[#allocation2 + $0x3e8] sm:$0xf0]  ;;  %v4413_v12 = vld [vmem:[#allocation2 + $0x3c4] sm:$0xf0] }
 0x1e6   :  { %v5252_v9 = vpop.f32.mrf.mxu3 }
 0x1e7   :  { %2483 = vmatpush.bf16.msra.mxu1 %v3958_v51  ;;  %v3687_v51 = vld [vmem:[#allocation2 + $0x198] sm:$0xf0]  ;;  %v1179_v6 = vadd.f32 %v5266_v13, %v1137_v5  ;;  %v1192_v59 = vadd.f32 %v5266_v13, %v1150_v52  ;;  %v3985_v5 = vld [vmem:[#allocation2 + $0x3c8] sm:$0xf0] }
 0x1e8   :  { %1733 = vmatpush.bf16.msrb.mxu3 %v3648_v27 }
 0x1e9   :  { %2399 = vmatpush.bf16.msrb.mxu2 %v3916_v61  ;;  %v4344_v61 = vld [vmem:[#allocation2 + $0x1a4] sm:$0xf] }
 0x1ea   :  { %v1059_v32 = vpop.permute.xlu0 %1058  ;;  %v3698_v49 = vor.u32 %v4344_v61, %v3695_v28 }
 0x1eb   :  { %3673 = vmatmul.msk.bf16.vlgmr.msra.gmra.mxu3 %vm1301_vm2, %v1659_v42  ;;  %3877 = vmatmul.msk.bf16.vlgmr.msra.gmra.mxu2 %vm1301_vm2, %v5254_v7  ;;  %v1148_v38 = vadd.f32 %v1059_v32, %v5116_v22  ;;  %v1136_v32 = vadd.f32 %v5161_v33, %v4962_v39  ;;  %v4004_v39 = vor.u32 %v4416_v62, %v4001_v46  ;;  %v4427_v62 = vld [vmem:[#allocation2 + $0x434] sm:$0xf0] }
 0x1ec   :  { %1801 = vmatpush.bf16.msra.mxu3 %v3702_v31  ;;  %2484 = vmatpush.bf16.msra.mxu1 %v3950_v0  ;;  %v4009_v31 = vld [vmem:[#allocation2 + $0x3f8] sm:$0xf0]  ;;  %v3679_v0 = vld [vmem:[#allocation2 + $0x188] sm:$0xf0] }
 0x1ed   :  { %v1190_v8 = vadd.f32 %v5266_v13, %v1148_v38  ;;  %v4012_v43 = vor.u32 %v4418_v30, %v4009_v31  ;;  %v3690_v38 = vor.u32 %v4342_v18, %v3687_v51  ;;  %v1178_v33 = vadd.f32 %v5266_v13, %v1136_v32  ;;  %v3727_v32 = vld [vmem:[#allocation2 + $0x1e0] sm:$0xf] }
 0x1ee   :  { %v1385_v44 = vpop.f32.mrf.mxu3 }
 0x1ef   :  { %v5261_v24 = vadd.f32 %v1385_v44, %v5223_v15  ;;  %v3678_v15 = vor.u32 %v4341_v2, %v3677_v45  ;;  %v1228_v53 = vmax.f32 %v1190_v8, 0.0  ;;  %2580 = vmatpush.bf16.msra.mxu0 %v4012_v43  ;;  %v4417_v44 = vld [vmem:[#allocation2 + $0x3e4] sm:$0xf0]  ;;  %v3991_v2 = vld [vmem:[#allocation2 + $0x3d0] sm:$0xf]  ;;  %v1216_v61 = vmax.f32 %v1178_v33, 0.0 }
 0x1f0   :  { %1802 = vmatpush.bf16.msra.mxu3 %v3694_v50  ;;  %v3999_v50 = vld [vmem:[#allocation2 + $0x3e0] sm:$0xf]  ;;  %v4414_v8 = vld [vmem:[#allocation2 + $0x3d4] sm:$0xf] }
 0x1f1   :  { %v4000_v4 = vor.u32 %v4417_v44, %v3999_v50  ;;  %v4041_v44 = vld [vmem:[#allocation2 + $0x430] sm:$0xf] }
 0x1f2   :  { %v1061_v27 = vpop.permute.xlu1 %1060 }
 0x1f3   :  { %v1149_v22 = vadd.f32 %v1061_v27, %v5122_v41  ;;  %v4419_v41 = vld [vmem:[#allocation2 + $0x3f4] sm:$0xf0]  ;;  %2581 = vmatpush.bf16.msra.mxu0 %v4004_v39  ;;  %v4033_v39 = vld [vmem:[#allocation2 + $0x420] sm:$0xf] }
 0x1f4   :  { %1803 = vmatpush.bf16.msra.mxu3 %v3686_v14  ;;  %v4340_v14 = vld [vmem:[#allocation2 + $0x184] sm:$0xf]  ;;  %v4415_v27 = vld [vmem:[#allocation2 + $0x3d4] sm:$0xf0] }
 0x1f5   :  { %v1191_v16 = vadd.f32 %v5266_v13, %v1149_v22  ;;  %v3993_v22 = vld [vmem:[#allocation2 + $0x3d8] sm:$0xf0]  ;;  %v3992_v21 = vor.u32 %v4415_v27, %v3991_v2  ;;  %v4425_v2 = vld [vmem:[#allocation2 + $0x424] sm:$0xf0] }
 0x1f6   :  { %v1387_v3 = vpop.f32.mrf.mxu3  ;;  %v3996_v17 = vor.u32 %v4414_v8, %v3993_v22  ;;  %v3711_v8 = vld [vmem:[#allocation2 + $0x1c0] sm:$0xf]  ;;  %v4349_v22 = vld [vmem:[#allocation2 + $0x1c4] sm:$0xf0] }
 0x1f7   :  { %v1229_v23 = vmax.f32 %v1191_v16, 0.0  ;;  %v5272_v54 = vadd.f32 %v1387_v3, %v5231_v58  ;;  %v4008_v58 = vor.u32 %v4419_v41, %v4007_v56  ;;  %v3682_v16 = vor.u32 %v4340_v14, %v3679_v0  ;;  %v3983_v56 = vld [vmem:[#allocation2 + $0x3c0] sm:$0xf]  ;;  %v4351_v14 = vld [vmem:[#allocation2 + $0x1d4] sm:$0xf0] }
 0x1f8   :  { %1804 = vmatpush.bf16.msra.mxu3 %v3678_v15  ;;  %v1217_v3 = vmax.f32 %v1179_v6, 0.0  ;;  %v1230_v41 = vmax.f32 %v1192_v59, 0.0  ;;  %2582 = vmatpush.bf16.msra.mxu0 %v3996_v17  ;;  %v3984_v43 = vor.u32 %v4413_v12, %v3983_v56  ;;  %v3719_v6 = vld [vmem:[#allocation2 + $0x1d0] sm:$0xf]  ;;  %v4435_v17 = vld [vmem:[#allocation2 + $0x474] sm:$0xf0] }
 0x1f9   :  { %v5274_v29 = vpack.c.bf16 %v1229_v23, %v1228_v53  ;;  %2566 = vmatpush.bf16.msra.mxu2 %v4008_v58  ;;  %v3735_v23 = vld [vmem:[#allocation2 + $0x1f0] sm:$0xf]  ;;  %v3720_v59 = vor.u32 %v4351_v14, %v3719_v6  ;;  %v4421_v12 = vld [vmem:[#allocation2 + $0x404] sm:$0xf0]  ;;  %v4350_v14 = vld [vmem:[#allocation2 + $0x1d4] sm:$0xf] }
 0x1fa   :  { %v1069_v15 = vpop.permute.xlu2 %1068  ;;  %v5296_v18 = vpack.c.bf16 %v1217_v3, %v1216_v61  ;;  %v3712_v3 = vor.u32 %v4349_v22, %v3711_v8  ;;  %v4354_v61 = vld [vmem:[#allocation2 + $0x1f4] sm:$0xf]  ;;  %v4053_v22 = vld [vmem:[#allocation2 + $0x448] sm:$0xf0] }
 0x1fb   :  { %3674 = vmatmul.msk.bf16.vlgmr.msrb.gmra.mxu3 %vm1301_vm2, %v1659_v42  ;;  %3911 = vmatmul.msk.bf16.vlgmr.msrb.gmra.mxu1 %vm1301_vm2, %v5274_v29  ;;  %v1153_v30 = vadd.f32 %v1069_v15, %v5147_v47  ;;  %v4025_v15 = vld [vmem:[#allocation2 + $0x410] sm:$0xf] }
 0x1fc   :  { %1815 = vmatpush.bf16.msrb.mxu3 %v3706_v26  ;;  %v4355_v26 = vld [vmem:[#allocation2 + $0x1f4] sm:$0xf0] }
 0x1fd   :  { %2567 = vmatpush.bf16.msra.mxu2 %v4000_v4  ;;  %v3736_v58 = vor.u32 %v4355_v26, %v3735_v23  ;;  %v1195_v47 = vadd.f32 %v5266_v13, %v1153_v30  ;;  %v4042_v4 = vor.u32 %v4427_v62, %v4041_v44  ;;  %v4434_v23 = vld [vmem:[#allocation2 + $0x474] sm:$0xf]  ;;  %v4077_v26 = vld [vmem:[#allocation2 + $0x478] sm:$0xf0] }
 0x1fe   :  { %v1399_v42 = vpop.f32.mrf.mxu3  ;;  %v4080_v56 = vor.u32 %v4434_v23, %v4077_v26  ;;  %v4061_v62 = vld [vmem:[#allocation2 + $0x458] sm:$0xf0]  ;;  %v4363_v23 = vld [vmem:[#allocation2 + $0x234] sm:$0xf0] }
 0x1ff   :  { %v5285_v60 = vadd.f32 %v1399_v42, %v5242_v48  ;;  %v4353_v42 = vld [vmem:[#allocation2 + $0x1e4] sm:$0xf0]  ;;  %2651 = vmatpush.bf16.msrb.mxu1 %v4042_v4 }
 0x200   :  { %1816 = vmatpush.bf16.msrb.mxu3 %v3698_v49  ;;  %v4412_v49 = vld [vmem:[#allocation2 + $0x3c4] sm:$0xf] }
 0x201   :  { %2568 = vmatpush.bf16.msra.mxu2 %v3992_v21  ;;  %v3988_v50 = vor.u32 %v4412_v49, %v3985_v5  ;;  %v4075_v21 = vld [vmem:[#allocation2 + $0x470] sm:$0xf]  ;;  %v4067_v49 = vld [vmem:[#allocation2 + $0x460] sm:$0xf]  ;;  %v4433_v5 = vld [vmem:[#allocation2 + $0x464] sm:$0xf0] }
 0x202   :  { %v1065_v45 = vpop.permute.xlu0 %1064 }
 0x203   :  { %v1151_v48 = vadd.f32 %v1065_v45, %v5133_v10  ;;  %2583 = vmatpush.bf16.msra.mxu0 %v3988_v50  ;;  %v3729_v50 = vld [vmem:[#allocation2 + $0x1e8] sm:$0xf0] }
 0x204   :  { %1817 = vmatpush.bf16.msrb.mxu3 %v3690_v38  ;;  %v3728_v38 = vor.u32 %v4353_v42, %v3727_v32  ;;  %v4069_v32 = vld [vmem:[#allocation2 + $0x468] sm:$0xf0]  ;;  %v4352_v42 = vld [vmem:[#allocation2 + $0x1e4] sm:$0xf] }
 0x205   :  { %v1193_v53 = vadd.f32 %v5266_v13, %v1151_v48  ;;  %2569 = vmatpush.bf16.msra.mxu2 %v3984_v43  ;;  %v4034_v48 = vor.u32 %v4425_v2, %v4033_v39  ;;  %v3732_v4 = vor.u32 %v4352_v42, %v3729_v50  ;;  %v4101_v50 = vld [vmem:[#allocation2 + $0x4a0] sm:$0xf] }
 0x206   :  { %v1401_v28 = vpop.f32.mrf.mxu3 }
 0x207   :  { %v1231_v10 = vmax.f32 %v1193_v53, 0.0  ;;  %v5294_v31 = vadd.f32 %v1401_v28, %v5252_v9  ;;  %2652 = vmatpush.bf16.msrb.mxu1 %v4034_v48  ;;  %v4076_v53 = vor.u32 %v4435_v17, %v4075_v21  ;;  %v3737_v28 = vld [vmem:[#allocation2 + $0x1f8] sm:$0xf0] }
 0x208   :  { %1818 = vmatpush.bf16.msrb.mxu3 %v3682_v16  ;;  %v4423_v16 = vld [vmem:[#allocation2 + $0x414] sm:$0xf0] }
 0x209   :  { %v2339_v51 = vpack.c.bf16 %v1231_v10, %v1230_v41  ;;  %v4017_v10 = vld [vmem:[#allocation2 + $0x400] sm:$0xf] }
 0x20a   :  { %v1067_v52 = vpop.permute.xlu1 %1066  ;;  %v4018_v43 = vor.u32 %v4421_v12, %v4017_v10  ;;  %v3761_v12 = vld [vmem:[#allocation2 + $0x220] sm:$0xf] }
 0x20b   :  { %v1152_v9 = vadd.f32 %v1067_v52, %v5140_v37  ;;  %3707 = vmatmul.msk.bf16.vlgmr.msra.gmra.mxu3 %vm1301_vm2, %v5296_v18  ;;  %3945 = vmatmul.msk.bf16.vlgmr.msrb.gmra.mxu2 %vm1301_vm2, %v2339_v51  ;;  %v1233_v37 = vmax.f32 %v1195_v47, 0.0  ;;  %v4068_v52 = vor.u32 %v4433_v5, %v4067_v49  ;;  %v4059_v47 = vld [vmem:[#allocation2 + $0x450] sm:$0xf]  ;;  %v4361_v49 = vld [vmem:[#allocation2 + $0x224] sm:$0xf0] }
 0x20c   :  { %3946 = vmatmul.msk.bf16.vlgmr.msrb.gmra.mxu0 %vm1301_vm2, %v2339_v51  ;;  %1886 = vmatpush.bf16.msra.mxu3 %v3736_v58  ;;  %v3740_v58 = vor.u32 %v4354_v61, %v3737_v28  ;;  %v4432_v51 = vld [vmem:[#allocation2 + $0x464] sm:$0xf]  ;;  %v3762_v5 = vor.u32 %v4361_v49, %v3761_v12 }
 0x20d   :  { %v1194_v46 = vadd.f32 %v5266_v13, %v1152_v9  ;;  %2736 = vmatpush.bf16.msrb.mxu2 %v4076_v53  ;;  %2750 = vmatpush.bf16.msrb.mxu0 %v4080_v56  ;;  %v4072_v44 = vor.u32 %v4432_v51, %v4069_v32  ;;  %v4430_v9 = vld [vmem:[#allocation2 + $0x454] sm:$0xf]  ;;  %v3769_v53 = vld [vmem:[#allocation2 + $0x230] sm:$0xf]  ;;  %v4359_v32 = vld [vmem:[#allocation2 + $0x214] sm:$0xf0] }
 0x20e   :  { %v1466_v0 = vpop.f32.mrf.mxu3  ;;  %v4064_v6 = vor.u32 %v4430_v9, %v4061_v62  ;;  %v3745_v62 = vld [vmem:[#allocation2 + $0x200] sm:$0xf] }
 0x20f   :  { %v1232_v33 = vmax.f32 %v1194_v46, 0.0  ;;  %v5306_v45 = vadd.f32 %v1466_v0, %v5261_v24  ;;  %v4026_v24 = vor.u32 %v4423_v16, %v4025_v15  ;;  %v3721_v0 = vld [vmem:[#allocation2 + $0x1d8] sm:$0xf0]  ;;  %v4348_v15 = vld [vmem:[#allocation2 + $0x1c4] sm:$0xf] }
 0x210   :  { %1887 = vmatpush.bf16.msra.mxu3 %v3728_v38  ;;  %v3724_v48 = vor.u32 %v4350_v14, %v3721_v0  ;;  %v3713_v16 = vld [vmem:[#allocation2 + $0x1c8] sm:$0xf0]  ;;  %v4439_v0 = vld [vmem:[#allocation2 + $0x494] sm:$0xf0] }
 0x211   :  { %v5308_v27 = vpack.c.bf16 %v1233_v37, %v1232_v33  ;;  %2653 = vmatpush.bf16.msrb.mxu1 %v4026_v24  ;;  %2737 = vmatpush.bf16.msrb.mxu2 %v4068_v52  ;;  %v4051_v37 = vld [vmem:[#allocation2 + $0x440] sm:$0xf] }
 0x212   :  { %2751 = vmatpush.bf16.msrb.mxu0 %v4072_v44 }
 0x213   :  { %3979 = vmatmul.msk.bf16.vlgmr.msra.gmra.mxu1 %vm1301_vm2, %v5308_v27 }
 0x214   :  { %1888 = vmatpush.bf16.msra.mxu3 %v3720_v59  ;;  %v4428_v59 = vld [vmem:[#allocation2 + $0x444] sm:$0xf] }
 0x215   :  { %2654 = vmatpush.bf16.msrb.mxu1 %v4018_v43  ;;  %v4056_v21 = vor.u32 %v4428_v59, %v4053_v22  ;;  %v1075_v43 = vpop.permute.xlu2 %1074 }
 0x216   :  { %v1468_v41 = vpop.f32.mrf.mxu3  ;;  %2752 = vmatpush.bf16.msrb.mxu0 %v4064_v6  ;;  %v1156_v52 = vadd.f32 %v1075_v43, %v5178_v25  ;;  %v3803_v43 = vld [vmem:[#allocation2 + $0x270] sm:$0xf] }
 0x217   :  { %v5313_v30 = vadd.f32 %v1468_v41, %v5272_v54  ;;  %v4431_v54 = vld [vmem:[#allocation2 + $0x454] sm:$0xf0]  ;;  %v3770_v41 = vor.u32 %v4363_v23, %v3769_v53 }
 0x218   :  { %1889 = vmatpush.bf16.msra.mxu3 %v3712_v3  ;;  %v4060_v46 = vor.u32 %v4431_v54, %v4059_v47  ;;  %v4441_v47 = vld [vmem:[#allocation2 + $0x4a4] sm:$0xf0]  ;;  %v1198_v6 = vadd.f32 %v5266_v13, %v1156_v52 }
 0x219   :  { %v4102_v9 = vor.u32 %v4441_v47, %v4101_v50  ;;  %v3787_v47 = vld [vmem:[#allocation2 + $0x250] sm:$0xf] }
 0x21a   :  { %v1071_v38 = vpop.permute.xlu0 %1070  ;;  %2738 = vmatpush.bf16.msrb.mxu2 %v4060_v46  ;;  %2753 = vmatpush.bf16.msrb.mxu0 %v4056_v21  ;;  %v4093_v46 = vld [vmem:[#allocation2 + $0x490] sm:$0xf] }
 0x21b   :  { %3708 = vmatmul.msk.bf16.vlgmr.msrb.gmra.mxu3 %vm1301_vm2, %v5296_v18  ;;  %v1154_v33 = vadd.f32 %v1071_v38, %v5155_v20  ;;  %v4429_v18 = vld [vmem:[#allocation2 + $0x444] sm:$0xf0]  ;;  %v3716_v20 = vor.u32 %v4348_v15, %v3713_v16 }
 0x21c   :  { %1900 = vmatpush.bf16.msrb.mxu3 %v3740_v58  ;;  %v4052_v8 = vor.u32 %v4429_v18, %v4051_v37  ;;  %v4443_v58 = vld [vmem:[#allocation2 + $0x4b4] sm:$0xf0]  ;;  %v4357_v38 = vld [vmem:[#allocation2 + $0x204] sm:$0xf0]  ;;  %v4094_v37 = vor.u32 %v4439_v0, %v4093_v46  ;;  %v3771_v18 = vld [vmem:[#allocation2 + $0x238] sm:$0xf0] }
 0x21d   :  { %v1196_v3 = vadd.f32 %v5266_v13, %v1154_v33  ;;  %v3746_v25 = vor.u32 %v4357_v38, %v3745_v62  ;;  %v4362_v33 = vld [vmem:[#allocation2 + $0x234] sm:$0xf]  ;;  %v4365_v46 = vld [vmem:[#allocation2 + $0x244] sm:$0xf0] }
 0x21e   :  { %v1480_v39 = vpop.f32.mrf.mxu3  ;;  %2739 = vmatpush.bf16.msrb.mxu2 %v4052_v8  ;;  %v1236_v8 = vmax.f32 %v1198_v6, 0.0  ;;  %v3774_v21 = vor.u32 %v4362_v33, %v3771_v18 }
 0x21f   :  { %v5319_v2 = vadd.f32 %v1480_v39, %v5285_v60  ;;  %v1234_v61 = vmax.f32 %v1196_v3, 0.0 }
 0x220   :  { %1901 = vmatpush.bf16.msrb.mxu3 %v3732_v4 }
 0x222   :  { %v1073_v17 = vpop.permute.xlu1 %1072 }
 0x223   :  { %v1155_v24 = vadd.f32 %v1073_v17, %v5165_v57  ;;  %v4109_v57 = vld [vmem:[#allocation2 + $0x4b0] sm:$0xf] }
 0x224   :  { %1902 = vmatpush.bf16.msrb.mxu3 %v3724_v48  ;;  %v4110_v51 = vor.u32 %v4443_v58, %v4109_v57  ;;  %v4085_v48 = vld [vmem:[#allocation2 + $0x480] sm:$0xf]  ;;  %v4356_v57 = vld [vmem:[#allocation2 + $0x204] sm:$0xf]  ;;  %v3747_v58 = vld [vmem:[#allocation2 + $0x208] sm:$0xf0] }
 0x225   :  { %v1197_v60 = vadd.f32 %v5266_v13, %v1155_v24  ;;  %v4360_v24 = vld [vmem:[#allocation2 + $0x224] sm:$0xf] }
 0x226   :  { %v1482_v26 = vpop.f32.mrf.mxu3  ;;  %2821 = vmatpush.bf16.msra.mxu1 %v4110_v51 }
 0x227   :  { %v1235_v28 = vmax.f32 %v1197_v60, 0.0  ;;  %v5325_v56 = vadd.f32 %v1482_v26, %v5294_v31  ;;  %v3753_v31 = vld [vmem:[#allocation2 + $0x210] sm:$0xf]  ;;  %v4358_v26 = vld [vmem:[#allocation2 + $0x214] sm:$0xf] }
 0x228   :  { %1903 = vmatpush.bf16.msrb.mxu3 %v3716_v20  ;;  %v3754_v54 = vor.u32 %v4359_v32, %v3753_v31  ;;  %v3763_v20 = vld [vmem:[#allocation2 + $0x228] sm:$0xf0] }
 0x229   :  { %v2509_v10 = vpack.c.bf16 %v1235_v28, %v1234_v61  ;;  %v3755_v61 = vld [vmem:[#allocation2 + $0x218] sm:$0xf0] }
 0x22a   :  { %2822 = vmatpush.bf16.msra.mxu1 %v4102_v9  ;;  %v1081_v39 = vpop.permute.xlu2 %1080  ;;  %v3758_v49 = vor.u32 %v4358_v26, %v3755_v61  ;;  %v3831_v26 = vld [vmem:[#allocation2 + $0x2a8] sm:$0xf0] }
 0x22b   :  { %3741 = vmatmul.msk.bf16.vlgmr.msra.gmra.mxu3 %vm1301_vm2, %v5183_v34  ;;  %4013 = vmatmul.msk.bf16.vlgmr.msra.gmra.mxu2 %vm1301_vm2, %v2509_v10  ;;  %v1159_v15 = vadd.f32 %v1081_v39, %v5202_v11  ;;  %v3766_v11 = vor.u32 %v4360_v24, %v3763_v20  ;;  %v3781_v24 = vld [vmem:[#allocation2 + $0x248] sm:$0xf0] }
 0x22c   :  { %4014 = vmatmul.msk.bf16.vlgmr.msra.gmra.mxu0 %vm1301_vm2, %v2509_v10  ;;  %1971 = vmatpush.bf16.msra.mxu3 %v3770_v41 }
 0x22d   :  { %v1201_v53 = vadd.f32 %v5266_v13, %v1159_v15  ;;  %v3789_v15 = vld [vmem:[#allocation2 + $0x258] sm:$0xf0] }
 0x22e   :  { %v1551_v42 = vpop.f32.mrf.mxu3  ;;  %2823 = vmatpush.bf16.msra.mxu1 %v4094_v37  ;;  %v4370_v37 = vld [vmem:[#allocation2 + $0x274] sm:$0xf] }
 0x22f   :  { %v5333_v44 = vadd.f32 %v1551_v42, %v5306_v45  ;;  %v1239_v41 = vmax.f32 %v1201_v53, 0.0  ;;  %v3795_v42 = vld [vmem:[#allocation2 + $0x260] sm:$0xf]  ;;  %v3839_v53 = vld [vmem:[#allocation2 + $0x2b8] sm:$0xf0] }
 0x230   :  { %1972 = vmatpush.bf16.msra.mxu3 %v3762_v5  ;;  %v4371_v5 = vld [vmem:[#allocation2 + $0x274] sm:$0xf0] }
 0x231   :  { %v3804_v32 = vor.u32 %v4371_v5, %v3803_v43  ;;  %v3873_v43 = vld [vmem:[#allocation2 + $0x2f8] sm:$0xf0] }
 0x232   :  { %v1077_v4 = vpop.permute.xlu0 %1076 }
 0x233   :  { %v1157_v14 = vadd.f32 %v1077_v4, %v5189_v1  ;;  %v4437_v1 = vld [vmem:[#allocation2 + $0x484] sm:$0xf0] }
 0x234   :  { %1973 = vmatpush.bf16.msra.mxu3 %v3754_v54  ;;  %v4086_v17 = vor.u32 %v4437_v1, %v4085_v48  ;;  %v4367_v54 = vld [vmem:[#allocation2 + $0x254] sm:$0xf0] }
 0x235   :  { %v1199_v45 = vadd.f32 %v5266_v13, %v1157_v14  ;;  %v3788_v4 = vor.u32 %v4367_v54, %v3787_v47 }
 0x236   :  { %v1553_v59 = vpop.f32.mrf.mxu3  ;;  %2824 = vmatpush.bf16.msra.mxu1 %v4086_v17  ;;  %v4364_v17 = vld [vmem:[#allocation2 + $0x244] sm:$0xf] }
 0x237   :  { %v1237_v22 = vmax.f32 %v1199_v45, 0.0  ;;  %v5340_v16 = vadd.f32 %v1553_v59, %v5313_v30  ;;  %v3805_v45 = vld [vmem:[#allocation2 + $0x278] sm:$0xf0]  ;;  %v3784_v20 = vor.u32 %v4364_v17, %v3781_v24  ;;  %v4406_v17 = vld [vmem:[#allocation2 + $0x394] sm:$0xf] }
 0x238   :  { %1974 = vmatpush.bf16.msra.mxu3 %v3746_v25  ;;  %v3808_v59 = vor.u32 %v4370_v37, %v3805_v45  ;;  %v4390_v37 = vld [vmem:[#allocation2 + $0x314] sm:$0xf]  ;;  %v3891_v45 = vld [vmem:[#allocation2 + $0x318] sm:$0xf0] }
 0x239   :  { %v5342_v3 = vpack.c.bf16 %v1237_v22, %v1236_v8  ;;  %v4368_v8 = vld [vmem:[#allocation2 + $0x264] sm:$0xf]  ;;  %v3797_v22 = vld [vmem:[#allocation2 + $0x268] sm:$0xf0]  ;;  %v3959_v24 = vld [vmem:[#allocation2 + $0x398] sm:$0xf0] }
 0x23a   :  { %v1079_v60 = vpop.permute.xlu1 %1078 }
 0x23b   :  { %v1158_v23 = vadd.f32 %v1079_v60, %v5195_v35  ;;  %3742 = vmatmul.msk.bf16.vlgmr.msrb.gmra.mxu3 %vm1301_vm2, %v5183_v34  ;;  %4047 = vmatmul.msk.bf16.vlgmr.msrb.gmra.mxu1 %vm1301_vm2, %v5342_v3  ;;  %v3750_v34 = vor.u32 %v4356_v57, %v3747_v58  ;;  %v4378_v60 = vld [vmem:[#allocation2 + $0x2b4] sm:$0xf]  ;;  %v3815_v57 = vld [vmem:[#allocation2 + $0x288] sm:$0xf0] }
 0x23c   :  { %1985 = vmatpush.bf16.msrb.mxu3 %v3774_v21 }
 0x23d   :  { %v1200_v30 = vadd.f32 %v5266_v13, %v1158_v23 }
 0x23e   :  { %v1565_v28 = vpop.f32.mrf.mxu3 }
 0x23f   :  { %v1238_v10 = vmax.f32 %v1200_v30, 0.0  ;;  %v1571_v12 = vadd.f32 %v1565_v28, %v5319_v2  ;;  %v4369_v2 = vld [vmem:[#allocation2 + $0x264] sm:$0xf0]  ;;  %v4376_v30 = vld [vmem:[#allocation2 + $0x2a4] sm:$0xf] }
 0x240   :  { %1986 = vmatpush.bf16.msrb.mxu3 %v3766_v11  ;;  %v3796_v52 = vor.u32 %v4369_v2, %v3795_v42  ;;  %v3834_v61 = vor.u32 %v4376_v30, %v3831_v26  ;;  %v4374_v28 = vld [vmem:[#allocation2 + $0x294] sm:$0xf]  ;;  %v3865_v42 = vld [vmem:[#allocation2 + $0x2e8] sm:$0xf0]  ;;  %v4043_v26 = vld [vmem:[#allocation2 + $0x438] sm:$0xf0] }
 0x241   :  { %v2679_v35 = vpack.c.bf16 %v1239_v41, %v1238_v10  ;;  %v3823_v41 = vld [vmem:[#allocation2 + $0x298] sm:$0xf0]  ;;  %v4426_v30 = vld [vmem:[#allocation2 + $0x434] sm:$0xf] }
 0x243   :  { %4081 = vmatmul.msk.bf16.vlgmr.msrb.gmra.mxu2 %vm1301_vm2, %v2679_v35  ;;  %4082 = vmatmul.msk.bf16.vlgmr.msrb.gmra.mxu0 %vm1301_vm2, %v2679_v35  ;;  %v4372_v35 = vld [vmem:[#allocation2 + $0x284] sm:$0xf] }
 0x244   :  { %1987 = vmatpush.bf16.msrb.mxu3 %v3758_v49  ;;  %v3826_v49 = vor.u32 %v4374_v28, %v3823_v41  ;;  %v3818_v58 = vor.u32 %v4372_v35, %v3815_v57  ;;  %v4046_v41 = vor.u32 %v4426_v30, %v4043_v26  ;;  %v4027_v35 = vld [vmem:[#allocation2 + $0x418] sm:$0xf0] }
 0x246   :  { %v1567_v51 = vpop.f32.mrf.mxu3 }
 0x247   :  { %v1573_v31 = vadd.f32 %v1567_v51, %v5325_v56  ;;  %v3779_v56 = vld [vmem:[#allocation2 + $0x240] sm:$0xf] }
 0x248   :  { %1988 = vmatpush.bf16.msrb.mxu3 %v3750_v34  ;;  %v3780_v39 = vor.u32 %v4365_v46, %v3779_v56  ;;  %v4386_v34 = vld [vmem:[#allocation2 + $0x2f4] sm:$0xf]  ;;  %v3907_v46 = vld [vmem:[#allocation2 + $0x338] sm:$0xf0] }
 0x249   :  { %v4394_v56 = vld [vmem:[#allocation2 + $0x334] sm:$0xf] }
 0x24a   :  { %v1083_v50 = vpop.permute.xlu0 %1082 }
 0x24b   :  { %3775 = vmatmul.msk.bf16.vlgmr.msra.gmra.mxu3 %vm1301_vm2, %v5193_v63  ;;  %v1160_v62 = vadd.f32 %v1083_v50, %v5214_v55  ;;  %v4382_v50 = vld [vmem:[#allocation2 + $0x2d4] sm:$0xf] }
 0x24c   :  { %2056 = vmatpush.bf16.msra.mxu3 %v3804_v32  ;;  %v4384_v32 = vld [vmem:[#allocation2 + $0x2e4] sm:$0xf] }
 0x24d   :  { %v1202_v14 = vadd.f32 %v5266_v13, %v1160_v62  ;;  %v3868_v2 = vor.u32 %v4384_v32, %v3865_v42  ;;  %v4380_v62 = vld [vmem:[#allocation2 + $0x2c4] sm:$0xf]  ;;  %v4442_v32 = vld [vmem:[#allocation2 + $0x4b4] sm:$0xf]  ;;  %v4111_v42 = vld [vmem:[#allocation2 + $0x4b8] sm:$0xf0] }
 0x24e   :  { %v1636_v9 = vpop.f32.mrf.mxu3 }
 0x24f   :  { %v1655_v38 = vadd.f32 %v1636_v9, %v5333_v44  ;;  %v1240_v18 = vmax.f32 %v1202_v14, 0.0 }
 0x250   :  { %2057 = vmatpush.bf16.msra.mxu3 %v3796_v52  ;;  %v3857_v52 = vld [vmem:[#allocation2 + $0x2d8] sm:$0xf0] }
 0x251   :  { %v3860_v9 = vor.u32 %v4382_v50, %v3857_v52  ;;  %v4440_v50 = vld [vmem:[#allocation2 + $0x4a4] sm:$0xf]  ;;  %v4103_v52 = vld [vmem:[#allocation2 + $0x4a8] sm:$0xf0] }
 0x252   :  { %v1085_v6 = vpop.permute.xlu1 %1084 }
 0x253   :  { %v1161_v0 = vadd.f32 %v1085_v6, %v5221_v19  ;;  %v3800_v19 = vor.u32 %v4368_v8, %v3797_v22  ;;  %v4410_v22 = vld [vmem:[#allocation2 + $0x3b4] sm:$0xf] }
 0x254   :  { %2058 = vmatpush.bf16.msra.mxu3 %v3788_v4 }
 0x255   :  { %v1203_v25 = vadd.f32 %v5266_v13, %v1161_v0  ;;  %v4366_v13 = vld [vmem:[#allocation2 + $0x254] sm:$0xf]  ;;  %v3910_v0 = vor.u32 %v4394_v56, %v3907_v46  ;;  %v4436_v46 = vld [vmem:[#allocation2 + $0x484] sm:$0xf] }
 0x256   :  { %v1638_v33 = vpop.f32.mrf.mxu3 }
 0x257   :  { %v1241_v55 = vmax.f32 %v1203_v25, 0.0  ;;  %v1657_v44 = vadd.f32 %v1638_v33, %v5340_v16  ;;  %v3792_v16 = vor.u32 %v4366_v13, %v3789_v15 }
 0x258   :  { %2059 = vmatpush.bf16.msra.mxu3 %v3780_v39  ;;  %v4392_v39 = vld [vmem:[#allocation2 + $0x324] sm:$0xf] }
 0x259   :  { %v5363_v48 = vpack.c.bf16 %v1241_v55, %v1240_v18  ;;  %v3894_v55 = vor.u32 %v4390_v37, %v3891_v45  ;;  %v4451_v45 = vld [vmem:[%s5493_s5 + $0x38] sm:$0xff] }
 0x25a   :  { %2997 = vmatpush.bf16.msra.mxu2 %v4451_v45 }
 0x25b   :  { %3776 = vmatmul.msk.bf16.vlgmr.msrb.gmra.mxu3 %vm1301_vm2, %v5193_v63  ;;  %4115 = vmatmul.msk.bf16.vlgmr.msra.gmra.mxu1 %vm1301_vm2, %v5363_v48  ;;  %v3842_v63 = vor.u32 %v4378_v60, %v3839_v53  ;;  %v3962_v53 = vor.u32 %v4406_v17, %v3959_v24  ;;  %v4445_v17 = vld [vmem:[%s5493_s5 + $0x8] sm:$0xff] }
 0x25c   :  { %2070 = vmatpush.bf16.msrb.mxu3 %v3808_v59  ;;  %v3883_v59 = vld [vmem:[#allocation2 + $0x308] sm:$0xf0] }
 0x25e   :  { %v1650_v1 = vpop.f32.mrf.mxu3 }
 0x25f   :  { %v1656_v21 = vadd.f32 %v1650_v1, %v1571_v12 }
 0x260   :  { %2071 = vmatpush.bf16.msrb.mxu3 %v3800_v19  ;;  %v3975_v19 = vld [vmem:[#allocation2 + $0x3b8] sm:$0xf0] }
 0x261   :  { %v3978_v1 = vor.u32 %v4410_v22, %v3975_v19 }
 0x264   :  { %2072 = vmatpush.bf16.msrb.mxu3 %v3792_v16 }
 0x266   :  { %v1652_v23 = vpop.f32.mrf.mxu3 }
 0x267   :  { %v1658_v11 = vadd.f32 %v1652_v23, %v1573_v31  ;;  %v3876_v31 = vor.u32 %v4386_v34, %v3873_v43  ;;  %v4404_v23 = vld [vmem:[#allocation2 + $0x384] sm:$0xf] }
 0x268   :  { %2073 = vmatpush.bf16.msrb.mxu3 %v3784_v20  ;;  %v4420_v43 = vld [vmem:[#allocation2 + $0x404] sm:$0xf] }
 0x26b   :  { %3809 = vmatmul.msk.bf16.vlgmr.msra.gmra.mxu3 %vm1301_vm2, %v5218_v40 }
 0x26c   :  { %2155 = vmatpush.bf16.msra.mxu3 %v3842_v63 }
 0x26e   :  { %v1721_v10 = vpop.f32.mrf.mxu3 }
 0x26f   :  { %v1740_v12 = vadd.f32 %v1721_v10, %v1655_v38  ;;  %v3849_v38 = vld [vmem:[#allocation2 + $0x2c8] sm:$0xf0]  ;;  %v4424_v10 = vld [vmem:[#allocation2 + $0x424] sm:$0xf] }
 0x270   :  { %2156 = vmatpush.bf16.msra.mxu3 %v3834_v61  ;;  %v3852_v4 = vor.u32 %v4380_v62, %v3849_v38  ;;  %v4095_v62 = vld [vmem:[#allocation2 + $0x498] sm:$0xf0] }
 0x274   :  { %2157 = vmatpush.bf16.msra.mxu3 %v3826_v49  ;;  %v4422_v49 = vld [vmem:[#allocation2 + $0x414] sm:$0xf] }
 0x275   :  { %v4030_v34 = vor.u32 %v4422_v49, %v4027_v35 }
 0x276   :  { %v1723_v5 = vpop.f32.mrf.mxu3 }
 0x277   :  { %v1742_v51 = vadd.f32 %v1723_v5, %v1657_v44  ;;  %v4388_v44 = vld [vmem:[#allocation2 + $0x304] sm:$0xf]  ;;  %v4019_v5 = vld [vmem:[#allocation2 + $0x408] sm:$0xf0] }
 0x278   :  { %2158 = vmatpush.bf16.msra.mxu3 %v3818_v58  ;;  %v3886_v8 = vor.u32 %v4388_v44, %v3883_v59  ;;  %v4449_v59 = vld [vmem:[%s5493_s5 + $0x28] sm:$0xff] }
 0x27b   :  { %3810 = vmatmul.msk.bf16.vlgmr.msrb.gmra.mxu3 %vm1301_vm2, %v5218_v40  ;;  %v3899_v40 = vld [vmem:[#allocation2 + $0x328] sm:$0xf0] }
 0x27c   :  { %2240 = vmatpush.bf16.msrb.mxu3 %v3876_v31  ;;  %v3902_v25 = vor.u32 %v4392_v39, %v3899_v40  ;;  %v4022_v31 = vor.u32 %v4420_v43, %v4019_v5 }
 0x27e   :  { %v1735_v47 = vpop.f32.mrf.mxu3 }
 0x27f   :  { %v1741_v54 = vadd.f32 %v1735_v47, %v1656_v21  ;;  %v3967_v21 = vld [vmem:[#allocation2 + $0x3a8] sm:$0xf0] }
 0x280   :  { %2241 = vmatpush.bf16.msrb.mxu3 %v3868_v2 }
 0x284   :  { %2242 = vmatpush.bf16.msrb.mxu3 %v3860_v9  ;;  %v4438_v9 = vld [vmem:[#allocation2 + $0x494] sm:$0xf] }
 0x285   :  { %v4098_v56 = vor.u32 %v4438_v9, %v4095_v62 }
 0x286   :  { %v1737_v6 = vpop.f32.mrf.mxu3 }
 0x287   :  { %v1743_v14 = vadd.f32 %v1737_v6, %v1658_v11  ;;  %v3951_v11 = vld [vmem:[#allocation2 + $0x388] sm:$0xf0] }
 0x288   :  { %2243 = vmatpush.bf16.msrb.mxu3 %v3852_v4  ;;  %v3954_v63 = vor.u32 %v4404_v23, %v3951_v11  ;;  %v4087_v6 = vld [vmem:[#allocation2 + $0x488] sm:$0xf0] }
 0x28b   :  { %3844 = vmatmul.msk.bf16.vlgmr.msra.gmra.mxu3 %vm1301_vm2, %v5234_v36  ;;  %v4408_v36 = vld [vmem:[#allocation2 + $0x3a4] sm:$0xf] }
 0x28c   :  { %2325 = vmatpush.bf16.msra.mxu3 %v3910_v0  ;;  %v3970_v16 = vor.u32 %v4408_v36, %v3967_v21  ;;  %v4446_v21 = vld [vmem:[%s5493_s5 + $0x10] sm:$0xff] }
 0x28e   :  { %v1806_v33 = vpop.f32.mrf.mxu3 }
 0x28f   :  { %v1825_v18 = vadd.f32 %v1806_v33, %v1740_v12 }
 0x290   :  { %2326 = vmatpush.bf16.msra.mxu3 %v3902_v25  ;;  %v2316_v25 = vpop.f32.mrf.mxu1 }
 0x294   :  { %2327 = vmatpush.bf16.msra.mxu3 %v3894_v55 }
 0x296   :  { %v1808_v13 = vpop.f32.mrf.mxu3 }
 0x297   :  { %v5375_v15 = vadd.f32 %v1808_v13, %v1742_v51  ;;  %v5383_v51 = vpop.f32.mrf.mxu2  ;;  %v4447_v13 = vld [vmem:[%s5493_s5 + $0x18] sm:$0xff] }
 0x298   :  { %2328 = vmatpush.bf16.msra.mxu3 %v3886_v8  ;;  %v2318_v33 = vpop.f32.mrf.mxu1  ;;  %v4448_v8 = vld [vmem:[%s5493_s5 + $0x20] sm:$0xff] }
 0x29b   :  { %3878 = vmatmul.msk.bf16.vlgmr.msrb.gmra.mxu3 %vm1301_vm2, %v5254_v7  ;;  %v4035_v7 = vld [vmem:[#allocation2 + $0x428] sm:$0xf0] }
 0x29c   :  { %2495 = vmatpush.bf16.msrb.mxu3 %v3978_v1  ;;  %v4038_v12 = vor.u32 %v4424_v10, %v4035_v7 }
 0x29e   :  { %v1820_v20 = vpop.f32.mrf.mxu3 }
 0x29f   :  { %v1826_v60 = vadd.f32 %v1820_v20, %v1741_v54  ;;  %v5387_v47 = vpop.f32.mrf.mxu2  ;;  %v4106_v54 = vor.u32 %v4440_v50, %v4103_v52  ;;  %v5424_v50 = vld [vmem:[%s5492_s4] sm:$0x3] }
 0x2a0   :  { %2496 = vmatpush.bf16.msrb.mxu3 %v3970_v16 }
 0x2a4   :  { %2497 = vmatpush.bf16.msrb.mxu3 %v3962_v53  ;;  %v4444_v53 = vld [vmem:[%s5493_s5] sm:$0xff] }
 0x2a6   :  { %v1822_v61 = vpop.f32.mrf.mxu3 }
 0x2a7   :  { %v1828_v28 = vadd.f32 %v1822_v61, %v1743_v14  ;;  %v4090_v14 = vor.u32 %v4436_v46, %v4087_v6  ;;  %v2231_v0 = vpop.f32.mrf.mxu2 }
 0x2a8   :  { %2498 = vmatpush.bf16.msrb.mxu3 %v3954_v63 }
 0x2ab   :  { %3912 = vmatmul.msk.bf16.vlgmr.msra.gmra.mxu3 %vm1301_vm2, %v5274_v29  ;;  %v4114_v29 = vor.u32 %v4442_v32, %v4111_v42 }
 0x2ac   :  { %2665 = vmatpush.bf16.msra.mxu3 %v4046_v41 }
 0x2ae   :  { %v1891_v57 = vpop.f32.mrf.mxu3 }
 0x2af   :  { %v5381_v58 = vadd.f32 %v1891_v57, %v1825_v18  ;;  %v2233_v37 = vpop.f32.mrf.mxu2  ;;  %v4450_v18 = vld [vmem:[%s5493_s5 + $0x30] sm:$0xff] }
 0x2b0   :  { %2666 = vmatpush.bf16.msra.mxu3 %v4038_v12  ;;  %2998 = vmatpush.bf16.msra.mxu2 %v4450_v18 }
 0x2b4   :  { %2667 = vmatpush.bf16.msra.mxu3 %v4030_v34  ;;  %2999 = vmatpush.bf16.msra.mxu2 %v4449_v59  ;;  %v4459_v59 = vld [vmem:[%s5493_s5 + $0x78] sm:$0xff] }
 0x2b5   :  { %3011 = vmatpush.bf16.msra.mxu0 %v4459_v59 }
 0x2b6   :  { %v1893_v2 = vpop.f32.mrf.mxu3 }
 0x2b7   :  { %v2401_v44 = vpop.f32.mrf.mxu2  ;;  %v1912_v30 = vadd.f32 %v1893_v2, %v5375_v15 }
 0x2b8   :  { %2668 = vmatpush.bf16.msra.mxu3 %v4022_v31  ;;  %3000 = vmatpush.bf16.msra.mxu2 %v4448_v8  ;;  %v2415_v8 = vpop.f32.mrf.mxu0 }
 0x2bb   :  { %3980 = vmatmul.msk.bf16.vlgmr.msrb.gmra.mxu3 %vm1301_vm2, %v5308_v27 }
 0x2bc   :  { %2835 = vmatpush.bf16.msrb.mxu3 %v4114_v29  ;;  %3001 = vmatpush.bf16.msra.mxu2 %v4447_v13  ;;  %v4456_v13 = vld [vmem:[%s5493_s5 + $0x60] sm:$0xff] }
 0x2be   :  { %v1905_v38 = vpop.f32.mrf.mxu3 }
 0x2bf   :  { %v1911_v4 = vadd.f32 %v1905_v38, %v1826_v60  ;;  %v2403_v1 = vpop.f32.mrf.mxu2 }
 0x2c0   :  { %2836 = vmatpush.bf16.msrb.mxu3 %v4106_v54  ;;  %3002 = vmatpush.bf16.msra.mxu2 %v4446_v21  ;;  %v2417_v21 = vpop.f32.mrf.mxu0 }
 0x2c4   :  { %2837 = vmatpush.bf16.msrb.mxu3 %v4098_v56  ;;  %3003 = vmatpush.bf16.msra.mxu2 %v4445_v17  ;;  %v4453_v17 = vld [vmem:[%s5493_s5 + $0x48] sm:$0xff] }
 0x2c6   :  { %v1907_v39 = vpop.f32.mrf.mxu3 }
 0x2c7   :  { %v1913_v40 = vadd.f32 %v1907_v39, %v1828_v28  ;;  %v2571_v24 = vpop.f32.mrf.mxu2 }
 0x2c8   :  { %2838 = vmatpush.bf16.msrb.mxu3 %v4090_v14  ;;  %3004 = vmatpush.bf16.msra.mxu2 %v4444_v53 }
 0x2cb   :  { %4048 = vmatmul.msk.bf16.vlgmr.msra.gmra.mxu3 %vm1301_vm2, %v5342_v3  ;;  %v2486_v3 = vpop.f32.mrf.mxu1 }
 0x2ce   :  { %v1976_v27 = vpop.f32.mrf.mxu3 }
 0x2cf   :  { %v1995_v60 = vadd.f32 %v1976_v27, %v5381_v58  ;;  %v2573_v61 = vpop.f32.mrf.mxu2 }
 0x2d3   :  { %v2488_v36 = vpop.f32.mrf.mxu1 }
 0x2d6   :  { %v1978_v55 = vpop.f32.mrf.mxu3 }
 0x2d7   :  { %v1997_v28 = vadd.f32 %v1978_v55, %v1912_v30  ;;  %v2741_v43 = vpop.f32.mrf.mxu2 }
 0x2db   :  { %4116 = vmatmul.msk.bf16.vlgmr.msrb.gmra.mxu3 %vm1301_vm2, %v5363_v48  ;;  %v2656_v20 = vpop.f32.mrf.mxu1 }
 0x2de   :  { %v1990_v22 = vpop.f32.mrf.mxu3 }
 0x2df   :  { %v1996_v19 = vadd.f32 %v1990_v22, %v1911_v4  ;;  %v2743_v62 = vpop.f32.mrf.mxu2 }
 0x2e3   :  { %v2658_v10 = vpop.f32.mrf.mxu1 }
 0x2e6   :  { %v1992_v48 = vpop.f32.mrf.mxu3 }
 0x2e7   :  { %v1998_v16 = vadd.f32 %v1992_v48, %v1913_v40  ;;  %v4454_v48 = vld [vmem:[%s5493_s5 + $0x50] sm:$0xff] }
 0x2eb   :  { %v2826_v32 = vpop.f32.mrf.mxu1 }
 0x2ee   :  { %v2061_v23 = vpop.f32.mrf.mxu3 }
 0x2ef   :  { %v2080_v11 = vadd.f32 %v2061_v23, %v1995_v60 }
 0x2f1   :  { %v2165_v63 = vadd.f32 %v5383_v51, %v2080_v11 }
 0x2f3   :  { %v2250_v26 = vadd.f32 %v2231_v0, %v2165_v63  ;;  %v2828_v46 = vpop.f32.mrf.mxu1 }
 0x2f5   :  { %v2335_v41 = vadd.f32 %v2316_v25, %v2250_v26 }
 0x2f6   :  { %v2063_v7 = vpop.f32.mrf.mxu3 }
 0x2f7   :  { %v2420_v12 = vadd.f32 %v2401_v44, %v2335_v41  ;;  %v2082_v49 = vadd.f32 %v2063_v7, %v1997_v28 }
 0x2f9   :  { %v2505_v35 = vadd.f32 %v2486_v3, %v2420_v12  ;;  %v2167_v57 = vadd.f32 %v5387_v47, %v2082_v49  ;;  %v2851_v47 = vperm.slane %v5424_v50, 0  ;;  %v4458_v3 = vld [vmem:[%s5493_s5 + $0x70] sm:$0xff] }
 0x2fa   :  { %3012 = vmatpush.bf16.msra.mxu0 %v4458_v3 }
 0x2fb   :  { %v2590_v58 = vadd.f32 %v2571_v24, %v2505_v35  ;;  %v2252_v34 = vadd.f32 %v2233_v37, %v2167_v57  ;;  %v2585_v24 = vpop.f32.mrf.mxu0 }
 0x2fd   :  { %v2675_v5 = vadd.f32 %v2656_v20, %v2590_v58  ;;  %v2337_v31 = vadd.f32 %v2318_v33, %v2252_v34  ;;  %v4452_v20 = vld [vmem:[%s5493_s5 + $0x40] sm:$0xff] }
 0x2fe   :  { %v2075_v51 = vpop.f32.mrf.mxu3 }
 0x2ff   :  { %v2422_v42 = vadd.f32 %v2403_v1, %v2337_v31  ;;  %v2081_v15 = vadd.f32 %v2075_v51, %v1996_v19  ;;  %v2760_v2 = vadd.f32 %v2741_v43, %v2675_v5  ;;  %v4457_v19 = vld [vmem:[%s5493_s5 + $0x68] sm:$0xff]  ;;  %v2852_v5 = vperm.slane %v5424_v50, 1 }
 0x300   :  { %3013 = vmatpush.bf16.msra.mxu0 %v4457_v19  ;;  %v4465_v50 = vld [vmem:[%s5495_s7 + $0x28] sm:$0xff] }
 0x301   :  { %v2507_v29 = vadd.f32 %v2488_v36, %v2422_v42  ;;  %v2845_v9 = vadd.f32 %v2826_v32, %v2760_v2  ;;  %v4455_v36 = vld [vmem:[%s5493_s5 + $0x58] sm:$0xff] }
 0x303   :  { %v2592_v52 = vadd.f32 %v2573_v61, %v2507_v29  ;;  %v2855_v14 = vadd.f32 %v2851_v47, %v2845_v9  ;;  %v2587_v11 = vpop.f32.mrf.mxu0  ;;  %v4467_v9 = vld [vmem:[%s5495_s7 + $0x38] sm:$0xff] }
 0x304   :  { %3014 = vmatpush.bf16.msra.mxu0 %v4456_v13  ;;  %3096 = vmatpush.bf16.msrb.mxu1 %v4467_v9 }
 0x305   :  { %v2677_v54 = vadd.f32 %v2658_v10, %v2592_v52  ;;  %v2859_v39 = vmax.f32 %v2855_v14, 0.0 }
 0x306   :  { %v2077_v38 = vpop.f32.mrf.mxu3 }
 0x307   :  { %v2762_v4 = vadd.f32 %v2743_v62, %v2677_v54  ;;  %v2083_v56 = vadd.f32 %v2077_v38, %v1998_v16  ;;  %v4464_v62 = vld [vmem:[%s5495_s7 + $0x20] sm:$0xff]  ;;  %v4463_v38 = vld [vmem:[%s5495_s7 + $0x18] sm:$0xff] }
 0x308   :  { %3015 = vmatpush.bf16.msra.mxu0 %v4455_v36 }
 0x309   :  { %v2847_v6 = vadd.f32 %v2828_v46, %v2762_v4  ;;  %v4462_v4 = vld [vmem:[%s5495_s7 + $0x10] sm:$0xff]  ;;  %v4460_v46 = vld [vmem:[%s5495_s7] sm:$0xff] }
 0x30b   :  { %v2857_v0 = vadd.f32 %v2851_v47, %v2847_v6  ;;  %v2755_v10 = vpop.f32.mrf.mxu0  ;;  %v4466_v47 = vld [vmem:[%s5495_s7 + $0x30] sm:$0xff] }
 0x30c   :  { %3016 = vmatpush.bf16.msra.mxu0 %v4454_v48  ;;  %3097 = vmatpush.bf16.msrb.mxu1 %v4466_v47 }
 0x30d   :  { %v2861_v40 = vmax.f32 %v2857_v0, 0.0  ;;  %v4473_v0 = vld [vmem:[%s5494_s6] ss:$0 sm:$0xff] }
 0x30e   :  { %v2160_v25 = vpop.f32.mrf.mxu3 }
 0x30f   :  { %v2166_v27 = vadd.f32 %v2160_v25, %v2081_v15  ;;  %v2863_v37 = vpack.c.bf16 %v2861_v40, %v2859_v39 }
 0x310   :  { %3017 = vmatpush.bf16.msra.mxu0 %v4453_v17  ;;  %3098 = vmatpush.bf16.msrb.mxu1 %v4465_v50 }
 0x311   :  { %3005 = vmatmul.bf16.vlgmr.msra.gmra.mxu2 %v2863_v37 }
 0x313   :  { %v2757_v31 = vpop.f32.mrf.mxu0 }
 0x314   :  { %3018 = vmatpush.bf16.msra.mxu0 %v4452_v20  ;;  %3099 = vmatpush.bf16.msrb.mxu1 %v4464_v62 }
 0x316   :  { %v2162_v45 = vpop.f32.mrf.mxu3 }
 0x317   :  { %v2168_v33 = vadd.f32 %v2162_v45, %v2083_v56  ;;  %v4461_v56 = vld [vmem:[%s5495_s7 + $0x8] sm:$0xff] }
 0x318   :  { %3100 = vmatpush.bf16.msrb.mxu1 %v4463_v38 }
 0x31c   :  { %3101 = vmatpush.bf16.msrb.mxu1 %v4462_v4 }
 0x31e   :  { %v2245_v18 = vpop.f32.mrf.mxu3 }
 0x31f   :  { %v2251_v53 = vadd.f32 %v2245_v18, %v2166_v27 }
 0x320   :  { %3102 = vmatpush.bf16.msrb.mxu1 %v4461_v56 }
 0x324   :  { %3103 = vmatpush.bf16.msrb.mxu1 %v4460_v46 }
 0x326   :  { %v2247_v55 = vpop.f32.mrf.mxu3 }
 0x327   :  { %v2253_v63 = vadd.f32 %v2247_v55, %v2168_v33 }
 0x32e   :  { %v2330_v44 = vpop.f32.mrf.mxu3 }
 0x32f   :  { %v2336_v23 = vadd.f32 %v2330_v44, %v2251_v53  ;;  %v4474_v44 = vld [vmem:[%s5496_s8] ss:$0 sm:$0xff] }
 0x331   :  { %v2421_v26 = vadd.f32 %v2415_v8, %v2336_v23 }
 0x336   :  { %v2332_v22 = vpop.f32.mrf.mxu3 }
 0x337   :  { %v2338_v30 = vadd.f32 %v2332_v22, %v2253_v63 }
 0x339   :  { %v2423_v41 = vadd.f32 %v2417_v21, %v2338_v30 }
 0x33e   :  { %v2500_v1 = vpop.f32.mrf.mxu3 }
 0x33f   :  { %v2506_v28 = vadd.f32 %v2500_v1, %v2421_v26 }
 0x341   :  { %v2591_v12 = vadd.f32 %v2585_v24, %v2506_v28 }
 0x346   :  { %v2502_v16 = vpop.f32.mrf.mxu3 }
 0x347   :  { %v2508_v7 = vadd.f32 %v2502_v16, %v2423_v41 }
 0x349   :  { %v2593_v57 = vadd.f32 %v2587_v11, %v2508_v7 }
 0x34e   :  { %v2670_v60 = vpop.f32.mrf.mxu3 }
 0x34f   :  { %v2676_v49 = vadd.f32 %v2670_v60, %v2591_v12 }
 0x351   :  { %v2761_v34 = vadd.f32 %v2755_v10, %v2676_v49 }
 0x356   :  { %v2672_v61 = vpop.f32.mrf.mxu3 }
 0x357   :  { %v2678_v58 = vadd.f32 %v2672_v61, %v2593_v57 }
 0x359   :  { %v2763_v32 = vadd.f32 %v2757_v31, %v2678_v58 }
 0x35e   :  { %v2840_v35 = vpop.f32.mrf.mxu3 }
 0x35f   :  { %v2846_v43 = vadd.f32 %v2840_v35, %v2761_v34 }
 0x361   :  { %v2856_v42 = vadd.f32 %v2852_v5, %v2846_v43 }
 0x363   :  { %v2860_v29 = vmax.f32 %v2856_v42, 0.0 }
 0x366   :  { %v2842_v51 = vpop.f32.mrf.mxu3 }
 0x367   :  { %v2848_v15 = vadd.f32 %v2842_v51, %v2763_v32 }
 0x369   :  { %v2858_v2 = vadd.f32 %v2852_v5, %v2848_v15 }
 0x36b   :  { %v2862_v52 = vmax.f32 %v2858_v2, 0.0 }
 0x36d   :  { %v2864_v54 = vpack.c.bf16 %v2862_v52, %v2860_v29 }
 0x36f   :  { %3019 = vmatmul.bf16.vlgmr.msra.gmra.mxu0 %v2864_v54 }
 0x394   :  { %v3006_v6 = vpop.f32.mrf.mxu2 }
 0x395   :  { %v3007_v40 = vadd.f32 %v4473_v0, %v3006_v6 }
 0x39c   :  { %v3008_v39 = vpop.f32.mrf.mxu2 }
 0x39d   :  { %v3009_v25 = vadd.f32 %v4473_v0, %v3008_v39 }
 0x3ec   :  { %v3020_v14 = vpop.f32.mrf.mxu0 }
 0x3ed   :  { %v3021_v27 = vadd.f32 %v3020_v14, %v3007_v40 }
 0x3ef   :  { %v3025_v33 = vmax.f32 %v3021_v27, 0.0 }
 0x3f4   :  { %v3022_v37 = vpop.f32.mrf.mxu0 }
 0x3f5   :  { %v3023_v45 = vadd.f32 %v3022_v37, %v3009_v25 }
 0x3f7   :  { %v3026_v18 = vmax.f32 %v3023_v45, 0.0 }
 0x3f9   :  { %v3027_v55 = vpack.c.bf16 %v3026_v18, %v3025_v33 }
 0x3fb   :  { %3104 = vmatmul.bf16.vlgmr.msrb.gmra.mxu1 %v3027_v55 }
 0x478   :  { %v3105_v59 = vpop.f32.mrf.mxu1 }
 0x479   :  { %v3106_v3 = vadd.f32 %v4474_v44, %v3105_v59 }
 0x47b   :  { %3110 = vmax.xlane.f32.xlu2 %v3106_v3 }
 0x480   :  { %v3107_v8 = vpop.f32.mrf.mxu1 }
 0x481   :  { %v3108_v22 = vadd.f32 %v4474_v44, %v3107_v8 }
 0x483   :  { %3112 = vmax.xlane.f32.xlu0 %v3108_v22 }
 0x4ee   :  { %v3111_v19 = vpop.xlane.xlu2 %3110 }
 0x4ef   :  { %v3114_v13 = vsub.f32 %v3106_v3, %v3111_v19 }
 0x4f1   :  { %v3116_v1 = vmul.f32 1.442695, %v3114_v13 }
 0x4f3   :  { %4475 = vpow2.f32 %v3116_v1 }
 0x4f6   :  { %v3113_v36 = vpop.xlane.xlu0 %3112 }
 0x4f7   :  { %v3115_v21 = vsub.f32 %v3108_v22, %v3113_v36 }
 0x4f9   :  { %v4476_v48 = vpop.eup %4475  ;;  %v3118_v16 = vmul.f32 1.442695, %v3115_v21 }
 0x4fa   :  { %3120 = vadd.xlane.f32.xlu1 %v4476_v48 }
 0x4fb   :  { %4477 = vpow2.f32 %v3118_v16 }
 0x501   :  { %v4478_v17 = vpop.eup %4477 }
 0x502   :  { %3122 = vadd.xlane.f32.xlu2 %v4478_v17 }
 0x56d   :  { %v3121_v24 = vpop.xlane.xlu1 %3120 }
 0x56e   :  { %4479 = vrcp.f32 %v3121_v24 }
 0x574   :  { %v4480_v20 = vpop.eup %4479 }
 0x575   :  { %v3126_v60 = vmul.f32 %v4480_v20, %v4476_v48  ;;  %v3123_v53 = vpop.xlane.xlu2 %3122 }
 0x576   :  { %4481 = vrcp.f32 %v3123_v53 }
 0x577   :  { %3128 = vst [vmem:[%s5497_s9] sm:$0xff] %v3126_v60 }
 0x57c   :  { %v4482_v23 = vpop.eup %4481 }
 0x57d   :  { %v3127_v11 = vmul.f32 %v4482_v23, %v4478_v17 }
 0x57f   :  { %3129 = vst [vmem:[%s5497_s9 + $0x8] sm:$0xff] %v3127_v11 }
 0x580   :  { %3134 = vsyncpa [#allocation3], 1 }

</bundles_post_ra>
